<compile_context>
chip_gen: v5e
topology: v5e:2x2
jax: 0.10.0
libtpu: 0.0.40
codegen_flags: <defaults>
</compile_context>

<pallas_src>
import functools

import jax
import jax.numpy as jnp
from jax.experimental import pallas as pl
from jax.experimental.pallas import tpu as pltpu


def _round_up(n, m):
    return ((n + m - 1) // m) * m


def _lstm_mean_fc_kernel(x_ref, wih_ref, whh_ref, b_ref, wfc_ref, bfc_ref,
                         out_ref, gi_ref, *, seq_len, hidden_pad):
    """Whole LandmarkLSTM forward in one kernel invocation.

    x_ref   : (T, Bp, Ip)   time-major, batch/feature padded input
    wih_ref : (Ip, 4*Hp)    input->hidden weights, gates in 128-lane slots
    whh_ref : (Hp, 4*Hp)    hidden->hidden weights, gates in 128-lane slots
    b_ref   : (1, 4*Hp)     b_ih + b_hh folded, gate-slot padded
    wfc_ref : (Hp, Cp)      fc weights (padded)
    bfc_ref : (1, Cp)       fc bias (padded)
    out_ref : (Bp, Cp)      logits (padded, lane-dense unmasked store)
    gi_ref  : (T, Bp, 4*Hp) VMEM scratch: precomputed input projection
    """
    T = seq_len
    Hp = hidden_pad
    _, Bp, Ip = x_ref.shape

    # ---- Phase 1: input projection for ALL timesteps as one matmul --------
    x_all = x_ref[...].reshape(T * Bp, Ip)                      # (T*Bp, Ip)
    gi_all = jnp.dot(x_all, wih_ref[...],
                     preferred_element_type=jnp.float32)        # (T*Bp, 4Hp)
    gi_all = gi_all + b_ref[...]                                # bias folded once
    gi_ref[...] = gi_all.reshape(T, Bp, 4 * Hp)

    # ---- Phase 2: time recurrence (only h @ W_hh per step) ----------------
    whh = whh_ref[...]                                          # hoisted load

    def step(t, carry):
        h, c, acc = carry
        gates = gi_ref[t] + jnp.dot(h, whh,
                                    preferred_element_type=jnp.float32)
        i_g = jax.nn.sigmoid(gates[:, 0 * Hp:1 * Hp])
        f_g = jax.nn.sigmoid(gates[:, 1 * Hp:2 * Hp])
        g_g = jnp.tanh(gates[:, 2 * Hp:3 * Hp])
        o_g = jax.nn.sigmoid(gates[:, 3 * Hp:4 * Hp])
        c_new = f_g * c + i_g * g_g
        h_new = o_g * jnp.tanh(c_new)
        return h_new, c_new, acc + h_new

    zeros = jnp.zeros((Bp, Hp), jnp.float32)
    _, _, acc = jax.lax.fori_loop(0, T, step, (zeros, zeros, zeros),
                                  unroll=True)

    # ---- Phase 3: mean over time, dropout (eval=identity), fc -------------
    rep = acc * (1.0 / T)
    # TODO(synk): training-mode dropout (p=0.8 stochastic masking) not implemented.
    logits = jnp.dot(rep, wfc_ref[...], preferred_element_type=jnp.float32)
    out_ref[...] = logits + bfc_ref[...]


def landmark_lstm_forward(landmarks, w_ih, w_hh, b_ih, b_hh, w_fc, b_fc):
    """LandmarkLSTM.forward in eval mode.

    landmarks : (B, T, 3, 20) float32
    w_ih      : (4H, I)  PyTorch LSTM layout, gate order [i, f, g, o], I = 60
    w_hh      : (4H, H)
    b_ih, b_hh: (4H,)
    w_fc      : (C, H), b_fc: (C,)
    returns (B, C) logits.
    """
    B, T = landmarks.shape[0], landmarks.shape[1]
    x = landmarks.reshape(B, T, -1).astype(jnp.float32)          # (B, T, I)
    I = x.shape[-1]
    H = w_hh.shape[1]
    C = w_fc.shape[0]

    Bp = _round_up(max(B, 8), 8)      # sublane height
    Ip = _round_up(I, 128)            # lane-dense input features
    Hp = _round_up(H, 128)            # one 128-lane slot per gate
    Cp = _round_up(C, 128)            # lane-dense output

    # Time-major, batch/feature padded input.
    x_tm = jnp.transpose(x, (1, 0, 2))                           # (T, B, I)
    x_pad = jnp.zeros((T, Bp, Ip), jnp.float32).at[:, :B, :I].set(x_tm)

    # Weights: transpose to (in, out) and place each gate in its own
    # 128-lane slot so in-kernel gate slices are lane-aligned.
    wih_t = jnp.transpose(w_ih).astype(jnp.float32)              # (I, 4H)
    whh_t = jnp.transpose(w_hh).astype(jnp.float32)              # (H, 4H)

    def scatter_gates(w, rows, rows_p):
        out = jnp.zeros((rows_p, 4 * Hp), jnp.float32)
        for g in range(4):
            out = out.at[:rows, g * Hp:g * Hp + H].set(w[:, g * H:(g + 1) * H])
        return out

    wih_pad = scatter_gates(wih_t, I, Ip)                        # (Ip, 4Hp)
    whh_pad = scatter_gates(whh_t, H, Hp)                        # (Hp, 4Hp)

    b = (b_ih + b_hh).astype(jnp.float32)                        # (4H,)
    b_pad = jnp.zeros((1, 4 * Hp), jnp.float32)
    for g in range(4):
        b_pad = b_pad.at[0, g * Hp:g * Hp + H].set(b[g * H:(g + 1) * H])

    wfc_pad = jnp.zeros((Hp, Cp), jnp.float32).at[:H, :C].set(
        jnp.transpose(w_fc).astype(jnp.float32))
    bfc_pad = jnp.zeros((1, Cp), jnp.float32).at[0, :C].set(
        b_fc.astype(jnp.float32))

    kernel = functools.partial(_lstm_mean_fc_kernel, seq_len=T, hidden_pad=Hp)
    vmem = lambda: pl.BlockSpec(memory_space=pltpu.MemorySpace.VMEM)

    out_pad = pl.pallas_call(
        kernel,
        out_shape=jax.ShapeDtypeStruct((Bp, Cp), jnp.float32),
        in_specs=[vmem() for _ in range(6)],
        out_specs=vmem(),
        scratch_shapes=[pltpu.VMEM((T, Bp, 4 * Hp), jnp.float32)],
    )(x_pad, wih_pad, whh_pad, b_pad, wfc_pad, bfc_pad)

    return out_pad[:B, :C]


def _reference_forward(landmarks, w_ih, w_hh, b_ih, b_hh, w_fc, b_fc):
    """Pure-JAX reference mirroring PyTorch nn.LSTM + mean + fc (eval mode)."""
    B, T = landmarks.shape[0], landmarks.shape[1]
    x = landmarks.reshape(B, T, -1).astype(jnp.float32)
    H = w_hh.shape[1]

    def step(carry, x_t):
        h, c = carry
        gates = x_t @ w_ih.T + b_ih + h @ w_hh.T + b_hh
        i, f, g, o = jnp.split(gates, 4, axis=-1)
        i = jax.nn.sigmoid(i)
        f = jax.nn.sigmoid(f)
        g = jnp.tanh(g)
        o = jax.nn.sigmoid(o)
        c_new = f * c + i * g
        h_new = o * jnp.tanh(c_new)
        return (h_new, c_new), h_new

    h0 = jnp.zeros((B, H), jnp.float32)
    c0 = jnp.zeros((B, H), jnp.float32)
    _, hs = jax.lax.scan(step, (h0, c0), jnp.transpose(x, (1, 0, 2)))
    rep = jnp.mean(hs, axis=0)
    return rep @ w_fc.T + b_fc


if __name__ == "__main__":
    # Shapes consistent with the module: (B, T, 3, 20) landmarks, hidden 64,
    # 2 classes.
    B, T, H, C = 2, 8, 64, 2
    I = 3 * 20

    key = jax.random.PRNGKey(0)
    k = jax.random.split(key, 7)

    # PyTorch LSTM default init: U(-1/sqrt(H), 1/sqrt(H)), gate order [i,f,g,o].
    bound = 1.0 / (H ** 0.5)
    landmarks = jax.random.normal(k[0], (B, T, 3, 20), dtype=jnp.float32)
    w_ih = jax.random.uniform(k[1], (4 * H, I), jnp.float32, -bound, bound)
    w_hh = jax.random.uniform(k[2], (4 * H, H), jnp.float32, -bound, bound)
    b_ih = jax.random.uniform(k[3], (4 * H,), jnp.float32, -bound, bound)
    b_hh = jax.random.uniform(k[4], (4 * H,), jnp.float32, -bound, bound)
    w_fc = jax.random.uniform(k[5], (C, H), jnp.float32, -bound, bound)
    b_fc = jax.random.uniform(k[6], (C,), jnp.float32, -bound, bound)

    out = landmark_lstm_forward(landmarks, w_ih, w_hh, b_ih, b_hh, w_fc, b_fc)
    out = jax.block_until_ready(out)

    ref = _reference_forward(landmarks, w_ih, w_hh, b_ih, b_hh, w_fc, b_fc)
    assert out.shape == (B, C)
    assert jnp.allclose(out, ref, atol=1e-5, rtol=1e-5), "mismatch vs reference"

    print("KERNEL_OK")
</pallas_src>

<mosaic_0001>
module attributes {stable_mosaic.version = 11 : i64} {
  func.func @_lstm_mean_fc_kernel(%arg0: memref<8x8x128xf32, #tpu.memory_space<vmem>>, %arg1: memref<128x512xf32, #tpu.memory_space<vmem>>, %arg2: memref<128x512xf32, #tpu.memory_space<vmem>>, %arg3: memref<1x512xf32, #tpu.memory_space<vmem>>, %arg4: memref<128x128xf32, #tpu.memory_space<vmem>>, %arg5: memref<1x128xf32, #tpu.memory_space<vmem>>, %arg6: memref<8x128xf32, #tpu.memory_space<vmem>>, %arg7: memref<8x8x512xf32, #tpu.memory_space<vmem>>) attributes {dimension_semantics = [], scalar_prefetch = 0 : i64, scratch_operands = 1 : i64, tpu.core_type = #tpu.core_type<tc>} {
    %c0 = arith.constant 0 : index
    %c0_0 = arith.constant 0 : index
    %c0_1 = arith.constant 0 : index
    %0 = vector.load %arg0[%c0, %c0_0, %c0_1] : memref<8x8x128xf32, #tpu.memory_space<vmem>>, vector<8x8x128xf32>
    %1 = vector.shape_cast %0 : vector<8x8x128xf32> to vector<64x128xf32>
    %c0_2 = arith.constant 0 : index
    %c0_3 = arith.constant 0 : index
    %2 = vector.load %arg1[%c0_2, %c0_3] : memref<128x512xf32, #tpu.memory_space<vmem>>, vector<128x512xf32>
    %cst = arith.constant dense<0.000000e+00> : vector<64x512xf32>
    %3 = tpu.matmul %1, %2, %cst {dimension_numbers = #tpu.dot_dimension_numbers<[1], [0], [0], [1], [0, 0, 1, 1], [], []>} : vector<64x128xf32>, vector<128x512xf32>, vector<64x512xf32> -> vector<64x512xf32>
    %c0_4 = arith.constant 0 : index
    %c0_5 = arith.constant 0 : index
    %4 = vector.load %arg3[%c0_4, %c0_5] : memref<1x512xf32, #tpu.memory_space<vmem>>, vector<1x512xf32>
    %5 = vector.broadcast %4 : vector<1x512xf32> to vector<64x512xf32>
    %6 = arith.addf %3, %5 : vector<64x512xf32>
    %7 = vector.shape_cast %6 : vector<64x512xf32> to vector<8x8x512xf32>
    %c0_6 = arith.constant 0 : index
    %c0_7 = arith.constant 0 : index
    %c0_8 = arith.constant 0 : index
    %8 = vector.load %arg7[%c0_6, %c0_7, %c0_8] : memref<8x8x512xf32, #tpu.memory_space<vmem>>, vector<8x8x512xf32>
    tpu.vector_store %arg7[%c0_6, %c0_7, %c0_8], %7 {strides = array<i32>} : memref<8x8x512xf32, #tpu.memory_space<vmem>>, vector<8x8x512xf32>,
    %c0_9 = arith.constant 0 : index
    %c0_10 = arith.constant 0 : index
    %9 = vector.load %arg2[%c0_9, %c0_10] : memref<128x512xf32, #tpu.memory_space<vmem>>, vector<128x512xf32>
    %cst_11 = arith.constant 0.000000e+00 : f32
    %10 = vector.broadcast %cst_11 : f32 to vector<8x128xf32>
    %c0_i32 = arith.constant 0 : i32
    %11 = arith.index_cast %c0_i32 : i32 to index
    %c0_12 = arith.constant 0 : index
    %c0_13 = arith.constant 0 : index
    %12 = vector.load %arg7[%11, %c0_12, %c0_13] : memref<8x8x512xf32, #tpu.memory_space<vmem>>, vector<1x8x512xf32>
    %13 = vector.shape_cast %12 : vector<1x8x512xf32> to vector<8x512xf32>
    %cst_14 = arith.constant dense<0.000000e+00> : vector<8x512xf32>
    %14 = tpu.matmul %10, %9, %cst_14 {dimension_numbers = #tpu.dot_dimension_numbers<[1], [0], [0], [1], [0, 0, 1, 1], [], []>} : vector<8x128xf32>, vector<128x512xf32>, vector<8x512xf32> -> vector<8x512xf32>
    %15 = arith.addf %13, %14 : vector<8x512xf32>
    %16 = vector.extract_strided_slice %15 {offsets = [0, 0], sizes = [8, 128], strides = [1, 1]} : vector<8x512xf32> to vector<8x128xf32>
    %17 = arith.negf %16 : vector<8x128xf32>
    %18 = math.exp %17 : vector<8x128xf32>
    %cst_15 = arith.constant 1.000000e+00 : f32
    %19 = vector.broadcast %cst_15 : f32 to vector<8x128xf32>
    %20 = arith.addf %19, %18 : vector<8x128xf32>
    %21 = arith.divf %19, %20 : vector<8x128xf32>
    %22 = vector.extract_strided_slice %15 {offsets = [0, 128], sizes = [8, 128], strides = [1, 1]} : vector<8x512xf32> to vector<8x128xf32>
    %23 = arith.negf %22 : vector<8x128xf32>
    %24 = math.exp %23 : vector<8x128xf32>
    %cst_16 = arith.constant 1.000000e+00 : f32
    %25 = vector.broadcast %cst_16 : f32 to vector<8x128xf32>
    %26 = arith.addf %25, %24 : vector<8x128xf32>
    %27 = arith.divf %25, %26 : vector<8x128xf32>
    %28 = vector.extract_strided_slice %15 {offsets = [0, 256], sizes = [8, 128], strides = [1, 1]} : vector<8x512xf32> to vector<8x128xf32>
    %29 = math.tanh %28 : vector<8x128xf32>
    %30 = vector.extract_strided_slice %15 {offsets = [0, 384], sizes = [8, 128], strides = [1, 1]} : vector<8x512xf32> to vector<8x128xf32>
    %31 = arith.negf %30 : vector<8x128xf32>
    %32 = math.exp %31 : vector<8x128xf32>
    %cst_17 = arith.constant 1.000000e+00 : f32
    %33 = vector.broadcast %cst_17 : f32 to vector<8x128xf32>
    %34 = arith.addf %33, %32 : vector<8x128xf32>
    %35 = arith.divf %33, %34 : vector<8x128xf32>
    %36 = arith.mulf %27, %10 : vector<8x128xf32>
    %37 = arith.mulf %21, %29 : vector<8x128xf32>
    %38 = arith.addf %36, %37 : vector<8x128xf32>
    %39 = math.tanh %38 : vector<8x128xf32>
    %40 = arith.mulf %35, %39 : vector<8x128xf32>
    %41 = arith.addf %10, %40 : vector<8x128xf32>
    %c1_i32 = arith.constant 1 : i32
    %42 = arith.index_cast %c1_i32 : i32 to index
    %c0_18 = arith.constant 0 : index
    %c0_19 = arith.constant 0 : index
    %43 = vector.load %arg7[%42, %c0_18, %c0_19] : memref<8x8x512xf32, #tpu.memory_space<vmem>>, vector<1x8x512xf32>
    %44 = vector.shape_cast %43 : vector<1x8x512xf32> to vector<8x512xf32>
    %cst_20 = arith.constant dense<0.000000e+00> : vector<8x512xf32>
    %45 = tpu.matmul %40, %9, %cst_20 {dimension_numbers = #tpu.dot_dimension_numbers<[1], [0], [0], [1], [0, 0, 1, 1], [], []>} : vector<8x128xf32>, vector<128x512xf32>, vector<8x512xf32> -> vector<8x512xf32>
    %46 = arith.addf %44, %45 : vector<8x512xf32>
    %47 = vector.extract_strided_slice %46 {offsets = [0, 0], sizes = [8, 128], strides = [1, 1]} : vector<8x512xf32> to vector<8x128xf32>
    %48 = arith.negf %47 : vector<8x128xf32>
    %49 = math.exp %48 : vector<8x128xf32>
    %cst_21 = arith.constant 1.000000e+00 : f32
    %50 = vector.broadcast %cst_21 : f32 to vector<8x128xf32>
    %51 = arith.addf %50, %49 : vector<8x128xf32>
    %52 = arith.divf %50, %51 : vector<8x128xf32>
    %53 = vector.extract_strided_slice %46 {offsets = [0, 128], sizes = [8, 128], strides = [1, 1]} : vector<8x512xf32> to vector<8x128xf32>
    %54 = arith.negf %53 : vector<8x128xf32>
    %55 = math.exp %54 : vector<8x128xf32>
    %cst_22 = arith.constant 1.000000e+00 : f32
    %56 = vector.broadcast %cst_22 : f32 to vector<8x128xf32>
    %57 = arith.addf %56, %55 : vector<8x128xf32>
    %58 = arith.divf %56, %57 : vector<8x128xf32>
    %59 = vector.extract_strided_slice %46 {offsets = [0, 256], sizes = [8, 128], strides = [1, 1]} : vector<8x512xf32> to vector<8x128xf32>
    %60 = math.tanh %59 : vector<8x128xf32>
    %61 = vector.extract_strided_slice %46 {offsets = [0, 384], sizes = [8, 128], strides = [1, 1]} : vector<8x512xf32> to vector<8x128xf32>
    %62 = arith.negf %61 : vector<8x128xf32>
    %63 = math.exp %62 : vector<8x128xf32>
    %cst_23 = arith.constant 1.000000e+00 : f32
    %64 = vector.broadcast %cst_23 : f32 to vector<8x128xf32>
    %65 = arith.addf %64, %63 : vector<8x128xf32>
    %66 = arith.divf %64, %65 : vector<8x128xf32>
    %67 = arith.mulf %58, %38 : vector<8x128xf32>
    %68 = arith.mulf %52, %60 : vector<8x128xf32>
    %69 = arith.addf %67, %68 : vector<8x128xf32>
    %70 = math.tanh %69 : vector<8x128xf32>
    %71 = arith.mulf %66, %70 : vector<8x128xf32>
    %72 = arith.addf %41, %71 : vector<8x128xf32>
    %c2_i32 = arith.constant 2 : i32
    %73 = arith.index_cast %c2_i32 : i32 to index
    %c0_24 = arith.constant 0 : index
    %c0_25 = arith.constant 0 : index
    %74 = vector.load %arg7[%73, %c0_24, %c0_25] : memref<8x8x512xf32, #tpu.memory_space<vmem>>, vector<1x8x512xf32>
    %75 = vector.shape_cast %74 : vector<1x8x512xf32> to vector<8x512xf32>
    %cst_26 = arith.constant dense<0.000000e+00> : vector<8x512xf32>
    %76 = tpu.matmul %71, %9, %cst_26 {dimension_numbers = #tpu.dot_dimension_numbers<[1], [0], [0], [1], [0, 0, 1, 1], [], []>} : vector<8x128xf32>, vector<128x512xf32>, vector<8x512xf32> -> vector<8x512xf32>
    %77 = arith.addf %75, %76 : vector<8x512xf32>
    %78 = vector.extract_strided_slice %77 {offsets = [0, 0], sizes = [8, 128], strides = [1, 1]} : vector<8x512xf32> to vector<8x128xf32>
    %79 = arith.negf %78 : vector<8x128xf32>
    %80 = math.exp %79 : vector<8x128xf32>
    %cst_27 = arith.constant 1.000000e+00 : f32
    %81 = vector.broadcast %cst_27 : f32 to vector<8x128xf32>
    %82 = arith.addf %81, %80 : vector<8x128xf32>
    %83 = arith.divf %81, %82 : vector<8x128xf32>
    %84 = vector.extract_strided_slice %77 {offsets = [0, 128], sizes = [8, 128], strides = [1, 1]} : vector<8x512xf32> to vector<8x128xf32>
    %85 = arith.negf %84 : vector<8x128xf32>
    %86 = math.exp %85 : vector<8x128xf32>
    %cst_28 = arith.constant 1.000000e+00 : f32
    %87 = vector.broadcast %cst_28 : f32 to vector<8x128xf32>
    %88 = arith.addf %87, %86 : vector<8x128xf32>
    %89 = arith.divf %87, %88 : vector<8x128xf32>
    %90 = vector.extract_strided_slice %77 {offsets = [0, 256], sizes = [8, 128], strides = [1, 1]} : vector<8x512xf32> to vector<8x128xf32>
    %91 = math.tanh %90 : vector<8x128xf32>
    %92 = vector.extract_strided_slice %77 {offsets = [0, 384], sizes = [8, 128], strides = [1, 1]} : vector<8x512xf32> to vector<8x128xf32>
    %93 = arith.negf %92 : vector<8x128xf32>
    %94 = math.exp %93 : vector<8x128xf32>
    %cst_29 = arith.constant 1.000000e+00 : f32
    %95 = vector.broadcast %cst_29 : f32 to vector<8x128xf32>
    %96 = arith.addf %95, %94 : vector<8x128xf32>
    %97 = arith.divf %95, %96 : vector<8x128xf32>
    %98 = arith.mulf %89, %69 : vector<8x128xf32>
    %99 = arith.mulf %83, %91 : vector<8x128xf32>
    %100 = arith.addf %98, %99 : vector<8x128xf32>
    %101 = math.tanh %100 : vector<8x128xf32>
    %102 = arith.mulf %97, %101 : vector<8x128xf32>
    %103 = arith.addf %72, %102 : vector<8x128xf32>
    %c3_i32 = arith.constant 3 : i32
    %104 = arith.index_cast %c3_i32 : i32 to index
    %c0_30 = arith.constant 0 : index
    %c0_31 = arith.constant 0 : index
    %105 = vector.load %arg7[%104, %c0_30, %c0_31] : memref<8x8x512xf32, #tpu.memory_space<vmem>>, vector<1x8x512xf32>
    %106 = vector.shape_cast %105 : vector<1x8x512xf32> to vector<8x512xf32>
    %cst_32 = arith.constant dense<0.000000e+00> : vector<8x512xf32>
    %107 = tpu.matmul %102, %9, %cst_32 {dimension_numbers = #tpu.dot_dimension_numbers<[1], [0], [0], [1], [0, 0, 1, 1], [], []>} : vector<8x128xf32>, vector<128x512xf32>, vector<8x512xf32> -> vector<8x512xf32>
    %108 = arith.addf %106, %107 : vector<8x512xf32>
    %109 = vector.extract_strided_slice %108 {offsets = [0, 0], sizes = [8, 128], strides = [1, 1]} : vector<8x512xf32> to vector<8x128xf32>
    %110 = arith.negf %109 : vector<8x128xf32>
    %111 = math.exp %110 : vector<8x128xf32>
    %cst_33 = arith.constant 1.000000e+00 : f32
    %112 = vector.broadcast %cst_33 : f32 to vector<8x128xf32>
    %113 = arith.addf %112, %111 : vector<8x128xf32>
    %114 = arith.divf %112, %113 : vector<8x128xf32>
    %115 = vector.extract_strided_slice %108 {offsets = [0, 128], sizes = [8, 128], strides = [1, 1]} : vector<8x512xf32> to vector<8x128xf32>
    %116 = arith.negf %115 : vector<8x128xf32>
    %117 = math.exp %116 : vector<8x128xf32>
    %cst_34 = arith.constant 1.000000e+00 : f32
    %118 = vector.broadcast %cst_34 : f32 to vector<8x128xf32>
    %119 = arith.addf %118, %117 : vector<8x128xf32>
    %120 = arith.divf %118, %119 : vector<8x128xf32>
    %121 = vector.extract_strided_slice %108 {offsets = [0, 256], sizes = [8, 128], strides = [1, 1]} : vector<8x512xf32> to vector<8x128xf32>
    %122 = math.tanh %121 : vector<8x128xf32>
    %123 = vector.extract_strided_slice %108 {offsets = [0, 384], sizes = [8, 128], strides = [1, 1]} : vector<8x512xf32> to vector<8x128xf32>
    %124 = arith.negf %123 : vector<8x128xf32>
    %125 = math.exp %124 : vector<8x128xf32>
    %cst_35 = arith.constant 1.000000e+00 : f32
    %126 = vector.broadcast %cst_35 : f32 to vector<8x128xf32>
    %127 = arith.addf %126, %125 : vector<8x128xf32>
    %128 = arith.divf %126, %127 : vector<8x128xf32>
    %129 = arith.mulf %120, %100 : vector<8x128xf32>
    %130 = arith.mulf %114, %122 : vector<8x128xf32>
    %131 = arith.addf %129, %130 : vector<8x128xf32>
    %132 = math.tanh %131 : vector<8x128xf32>
    %133 = arith.mulf %128, %132 : vector<8x128xf32>
    %134 = arith.addf %103, %133 : vector<8x128xf32>
    %c4_i32 = arith.constant 4 : i32
    %135 = arith.index_cast %c4_i32 : i32 to index
    %c0_36 = arith.constant 0 : index
    %c0_37 = arith.constant 0 : index
    %136 = vector.load %arg7[%135, %c0_36, %c0_37] : memref<8x8x512xf32, #tpu.memory_space<vmem>>, vector<1x8x512xf32>
    %137 = vector.shape_cast %136 : vector<1x8x512xf32> to vector<8x512xf32>
    %cst_38 = arith.constant dense<0.000000e+00> : vector<8x512xf32>
    %138 = tpu.matmul %133, %9, %cst_38 {dimension_numbers = #tpu.dot_dimension_numbers<[1], [0], [0], [1], [0, 0, 1, 1], [], []>} : vector<8x128xf32>, vector<128x512xf32>, vector<8x512xf32> -> vector<8x512xf32>
    %139 = arith.addf %137, %138 : vector<8x512xf32>
    %140 = vector.extract_strided_slice %139 {offsets = [0, 0], sizes = [8, 128], strides = [1, 1]} : vector<8x512xf32> to vector<8x128xf32>
    %141 = arith.negf %140 : vector<8x128xf32>
    %142 = math.exp %141 : vector<8x128xf32>
    %cst_39 = arith.constant 1.000000e+00 : f32
    %143 = vector.broadcast %cst_39 : f32 to vector<8x128xf32>
    %144 = arith.addf %143, %142 : vector<8x128xf32>
    %145 = arith.divf %143, %144 : vector<8x128xf32>
    %146 = vector.extract_strided_slice %139 {offsets = [0, 128], sizes = [8, 128], strides = [1, 1]} : vector<8x512xf32> to vector<8x128xf32>
    %147 = arith.negf %146 : vector<8x128xf32>
    %148 = math.exp %147 : vector<8x128xf32>
    %cst_40 = arith.constant 1.000000e+00 : f32
    %149 = vector.broadcast %cst_40 : f32 to vector<8x128xf32>
    %150 = arith.addf %149, %148 : vector<8x128xf32>
    %151 = arith.divf %149, %150 : vector<8x128xf32>
    %152 = vector.extract_strided_slice %139 {offsets = [0, 256], sizes = [8, 128], strides = [1, 1]} : vector<8x512xf32> to vector<8x128xf32>
    %153 = math.tanh %152 : vector<8x128xf32>
    %154 = vector.extract_strided_slice %139 {offsets = [0, 384], sizes = [8, 128], strides = [1, 1]} : vector<8x512xf32> to vector<8x128xf32>
    %155 = arith.negf %154 : vector<8x128xf32>
    %156 = math.exp %155 : vector<8x128xf32>
    %cst_41 = arith.constant 1.000000e+00 : f32
    %157 = vector.broadcast %cst_41 : f32 to vector<8x128xf32>
    %158 = arith.addf %157, %156 : vector<8x128xf32>
    %159 = arith.divf %157, %158 : vector<8x128xf32>
    %160 = arith.mulf %151, %131 : vector<8x128xf32>
    %161 = arith.mulf %145, %153 : vector<8x128xf32>
    %162 = arith.addf %160, %161 : vector<8x128xf32>
    %163 = math.tanh %162 : vector<8x128xf32>
    %164 = arith.mulf %159, %163 : vector<8x128xf32>
    %165 = arith.addf %134, %164 : vector<8x128xf32>
    %c5_i32 = arith.constant 5 : i32
    %166 = arith.index_cast %c5_i32 : i32 to index
    %c0_42 = arith.constant 0 : index
    %c0_43 = arith.constant 0 : index
    %167 = vector.load %arg7[%166, %c0_42, %c0_43] : memref<8x8x512xf32, #tpu.memory_space<vmem>>, vector<1x8x512xf32>
    %168 = vector.shape_cast %167 : vector<1x8x512xf32> to vector<8x512xf32>
    %cst_44 = arith.constant dense<0.000000e+00> : vector<8x512xf32>
    %169 = tpu.matmul %164, %9, %cst_44 {dimension_numbers = #tpu.dot_dimension_numbers<[1], [0], [0], [1], [0, 0, 1, 1], [], []>} : vector<8x128xf32>, vector<128x512xf32>, vector<8x512xf32> -> vector<8x512xf32>
    %170 = arith.addf %168, %169 : vector<8x512xf32>
    %171 = vector.extract_strided_slice %170 {offsets = [0, 0], sizes = [8, 128], strides = [1, 1]} : vector<8x512xf32> to vector<8x128xf32>
    %172 = arith.negf %171 : vector<8x128xf32>
    %173 = math.exp %172 : vector<8x128xf32>
    %cst_45 = arith.constant 1.000000e+00 : f32
    %174 = vector.broadcast %cst_45 : f32 to vector<8x128xf32>
    %175 = arith.addf %174, %173 : vector<8x128xf32>
    %176 = arith.divf %174, %175 : vector<8x128xf32>
    %177 = vector.extract_strided_slice %170 {offsets = [0, 128], sizes = [8, 128], strides = [1, 1]} : vector<8x512xf32> to vector<8x128xf32>
    %178 = arith.negf %177 : vector<8x128xf32>
    %179 = math.exp %178 : vector<8x128xf32>
    %cst_46 = arith.constant 1.000000e+00 : f32
    %180 = vector.broadcast %cst_46 : f32 to vector<8x128xf32>
    %181 = arith.addf %180, %179 : vector<8x128xf32>
    %182 = arith.divf %180, %181 : vector<8x128xf32>
    %183 = vector.extract_strided_slice %170 {offsets = [0, 256], sizes = [8, 128], strides = [1, 1]} : vector<8x512xf32> to vector<8x128xf32>
    %184 = math.tanh %183 : vector<8x128xf32>
    %185 = vector.extract_strided_slice %170 {offsets = [0, 384], sizes = [8, 128], strides = [1, 1]} : vector<8x512xf32> to vector<8x128xf32>
    %186 = arith.negf %185 : vector<8x128xf32>
    %187 = math.exp %186 : vector<8x128xf32>
    %cst_47 = arith.constant 1.000000e+00 : f32
    %188 = vector.broadcast %cst_47 : f32 to vector<8x128xf32>
    %189 = arith.addf %188, %187 : vector<8x128xf32>
    %190 = arith.divf %188, %189 : vector<8x128xf32>
    %191 = arith.mulf %182, %162 : vector<8x128xf32>
    %192 = arith.mulf %176, %184 : vector<8x128xf32>
    %193 = arith.addf %191, %192 : vector<8x128xf32>
    %194 = math.tanh %193 : vector<8x128xf32>
    %195 = arith.mulf %190, %194 : vector<8x128xf32>
    %196 = arith.addf %165, %195 : vector<8x128xf32>
    %c6_i32 = arith.constant 6 : i32
    %197 = arith.index_cast %c6_i32 : i32 to index
    %c0_48 = arith.constant 0 : index
    %c0_49 = arith.constant 0 : index
    %198 = vector.load %arg7[%197, %c0_48, %c0_49] : memref<8x8x512xf32, #tpu.memory_space<vmem>>, vector<1x8x512xf32>
    %199 = vector.shape_cast %198 : vector<1x8x512xf32> to vector<8x512xf32>
    %cst_50 = arith.constant dense<0.000000e+00> : vector<8x512xf32>
    %200 = tpu.matmul %195, %9, %cst_50 {dimension_numbers = #tpu.dot_dimension_numbers<[1], [0], [0], [1], [0, 0, 1, 1], [], []>} : vector<8x128xf32>, vector<128x512xf32>, vector<8x512xf32> -> vector<8x512xf32>
    %201 = arith.addf %199, %200 : vector<8x512xf32>
    %202 = vector.extract_strided_slice %201 {offsets = [0, 0], sizes = [8, 128], strides = [1, 1]} : vector<8x512xf32> to vector<8x128xf32>
    %203 = arith.negf %202 : vector<8x128xf32>
    %204 = math.exp %203 : vector<8x128xf32>
    %cst_51 = arith.constant 1.000000e+00 : f32
    %205 = vector.broadcast %cst_51 : f32 to vector<8x128xf32>
    %206 = arith.addf %205, %204 : vector<8x128xf32>
    %207 = arith.divf %205, %206 : vector<8x128xf32>
    %208 = vector.extract_strided_slice %201 {offsets = [0, 128], sizes = [8, 128], strides = [1, 1]} : vector<8x512xf32> to vector<8x128xf32>
    %209 = arith.negf %208 : vector<8x128xf32>
    %210 = math.exp %209 : vector<8x128xf32>
    %cst_52 = arith.constant 1.000000e+00 : f32
    %211 = vector.broadcast %cst_52 : f32 to vector<8x128xf32>
    %212 = arith.addf %211, %210 : vector<8x128xf32>
    %213 = arith.divf %211, %212 : vector<8x128xf32>
    %214 = vector.extract_strided_slice %201 {offsets = [0, 256], sizes = [8, 128], strides = [1, 1]} : vector<8x512xf32> to vector<8x128xf32>
    %215 = math.tanh %214 : vector<8x128xf32>
    %216 = vector.extract_strided_slice %201 {offsets = [0, 384], sizes = [8, 128], strides = [1, 1]} : vector<8x512xf32> to vector<8x128xf32>
    %217 = arith.negf %216 : vector<8x128xf32>
    %218 = math.exp %217 : vector<8x128xf32>
    %cst_53 = arith.constant 1.000000e+00 : f32
    %219 = vector.broadcast %cst_53 : f32 to vector<8x128xf32>
    %220 = arith.addf %219, %218 : vector<8x128xf32>
    %221 = arith.divf %219, %220 : vector<8x128xf32>
    %222 = arith.mulf %213, %193 : vector<8x128xf32>
    %223 = arith.mulf %207, %215 : vector<8x128xf32>
    %224 = arith.addf %222, %223 : vector<8x128xf32>
    %225 = math.tanh %224 : vector<8x128xf32>
    %226 = arith.mulf %221, %225 : vector<8x128xf32>
    %227 = arith.addf %196, %226 : vector<8x128xf32>
    %c7_i32 = arith.constant 7 : i32
    %228 = arith.index_cast %c7_i32 : i32 to index
    %c0_54 = arith.constant 0 : index
    %c0_55 = arith.constant 0 : index
    %229 = vector.load %arg7[%228, %c0_54, %c0_55] : memref<8x8x512xf32, #tpu.memory_space<vmem>>, vector<1x8x512xf32>
    %230 = vector.shape_cast %229 : vector<1x8x512xf32> to vector<8x512xf32>
    %cst_56 = arith.constant dense<0.000000e+00> : vector<8x512xf32>
    %231 = tpu.matmul %226, %9, %cst_56 {dimension_numbers = #tpu.dot_dimension_numbers<[1], [0], [0], [1], [0, 0, 1, 1], [], []>} : vector<8x128xf32>, vector<128x512xf32>, vector<8x512xf32> -> vector<8x512xf32>
    %232 = arith.addf %230, %231 : vector<8x512xf32>
    %233 = vector.extract_strided_slice %232 {offsets = [0, 0], sizes = [8, 128], strides = [1, 1]} : vector<8x512xf32> to vector<8x128xf32>
    %234 = arith.negf %233 : vector<8x128xf32>
    %235 = math.exp %234 : vector<8x128xf32>
    %cst_57 = arith.constant 1.000000e+00 : f32
    %236 = vector.broadcast %cst_57 : f32 to vector<8x128xf32>
    %237 = arith.addf %236, %235 : vector<8x128xf32>
    %238 = arith.divf %236, %237 : vector<8x128xf32>
    %239 = vector.extract_strided_slice %232 {offsets = [0, 128], sizes = [8, 128], strides = [1, 1]} : vector<8x512xf32> to vector<8x128xf32>
    %240 = arith.negf %239 : vector<8x128xf32>
    %241 = math.exp %240 : vector<8x128xf32>
    %cst_58 = arith.constant 1.000000e+00 : f32
    %242 = vector.broadcast %cst_58 : f32 to vector<8x128xf32>
    %243 = arith.addf %242, %241 : vector<8x128xf32>
    %244 = arith.divf %242, %243 : vector<8x128xf32>
    %245 = vector.extract_strided_slice %232 {offsets = [0, 256], sizes = [8, 128], strides = [1, 1]} : vector<8x512xf32> to vector<8x128xf32>
    %246 = math.tanh %245 : vector<8x128xf32>
    %247 = vector.extract_strided_slice %232 {offsets = [0, 384], sizes = [8, 128], strides = [1, 1]} : vector<8x512xf32> to vector<8x128xf32>
    %248 = arith.negf %247 : vector<8x128xf32>
    %249 = math.exp %248 : vector<8x128xf32>
    %cst_59 = arith.constant 1.000000e+00 : f32
    %250 = vector.broadcast %cst_59 : f32 to vector<8x128xf32>
    %251 = arith.addf %250, %249 : vector<8x128xf32>
    %252 = arith.divf %250, %251 : vector<8x128xf32>
    %253 = arith.mulf %244, %224 : vector<8x128xf32>
    %254 = arith.mulf %238, %246 : vector<8x128xf32>
    %255 = arith.addf %253, %254 : vector<8x128xf32>
    %256 = math.tanh %255 : vector<8x128xf32>
    %257 = arith.mulf %252, %256 : vector<8x128xf32>
    %258 = arith.addf %227, %257 : vector<8x128xf32>
    %c8_i32 = arith.constant 8 : i32
    %cst_60 = arith.constant 1.250000e-01 : f32
    %259 = vector.broadcast %cst_60 : f32 to vector<8x128xf32>
    %260 = arith.mulf %258, %259 : vector<8x128xf32>
    %c0_61 = arith.constant 0 : index
    %c0_62 = arith.constant 0 : index
    %261 = vector.load %arg4[%c0_61, %c0_62] : memref<128x128xf32, #tpu.memory_space<vmem>>, vector<128x128xf32>
    %cst_63 = arith.constant dense<0.000000e+00> : vector<8x128xf32>
    %262 = tpu.matmul %260, %261, %cst_63 {dimension_numbers = #tpu.dot_dimension_numbers<[1], [0], [0], [1], [0, 0, 1, 1], [], []>} : vector<8x128xf32>, vector<128x128xf32>, vector<8x128xf32> -> vector<8x128xf32>
    %c0_64 = arith.constant 0 : index
    %c0_65 = arith.constant 0 : index
    %263 = vector.load %arg5[%c0_64, %c0_65] : memref<1x128xf32, #tpu.memory_space<vmem>>, vector<1x128xf32>
    %264 = vector.broadcast %263 : vector<1x128xf32> to vector<8x128xf32>
    %265 = arith.addf %262, %264 : vector<8x128xf32>
    %c0_66 = arith.constant 0 : index
    %c0_67 = arith.constant 0 : index
    %266 = vector.load %arg6[%c0_66, %c0_67] : memref<8x128xf32, #tpu.memory_space<vmem>>, vector<8x128xf32>
    tpu.vector_store %arg6[%c0_66, %c0_67], %265 {strides = array<i32>} : memref<8x128xf32, #tpu.memory_space<vmem>>, vector<8x128xf32>,
    return
  }
}

</mosaic_0001>

<bundles_post_ra>
// kernel: tpu_custom_call.1
= control target key start
LH: loop header
LB: loop body
LE: loop exit
PB: predicated region body
PF: predicated region fallthrough
CT: control target
= control target key end

     0   :  { %11 = vsyncpa [#allocation4], 0  ;;  %s3098_s0 = inlined_call_operand.hbm [shape: f32[8,8,128], index: 0, kind: input, shape index: {}]   ;;  %s3099_s1 = inlined_call_operand.hbm [shape: f32[128,512], index: 1, kind: input, shape index: {}]   ;;  %s3100_s2 = inlined_call_operand.hbm [shape: f32[128,512], index: 2, kind: input, shape index: {}]   ;;  %s3101_s3 = inlined_call_operand.hbm [shape: f32[1,512], index: 3, kind: input, shape index: {}]   ;;  %s3102_s4 = inlined_call_operand.hbm [shape: f32[128,128], index: 4, kind: input, shape index: {}]   ;;  %s3103_s5 = inlined_call_operand.vmem [shape: f32[1,128], index: 5, kind: input, shape index: {}]   ;;  %s3104_s6 = inlined_call_operand.hbm [shape: f32[8,128], index: 6, kind: output, shape index: {}]  }
   0x1   :  { %12 = vsyncpa [#allocation7], 0 }
   0x2   :  { %13 = vsyncpa [#allocation10], 0  ;;  %s32_s23 = sshll.u32 %s3099_s1, 4  ;;  %s33_s23 = int_to_ptr.hbm [resolvable:$true] %s32_s23 }
   0x3   :  { %14 = vsyncpa [#allocation5], 0  ;;  %s2106_s24 = smov [#allocation6]   ;;  %s59_s28 = sshll.u32 %s3101_s3, 4  ;;  %s60_s28 = int_to_ptr.hbm [resolvable:$true] %s59_s28 }
   0x4   :  { %s34_s25 = sshll.u32 %s2106_s24, 4  ;;  %s2107_s29 = smov 512   ;;  %s35_s25 = int_to_ptr.vmem [resolvable:$true] %s34_s25 }
   0x5   :  { %s2108_s30 = smov 32   ;;  %s2109_s7 = smov [#allocation9]  }
   0x6   :  { %40 = dma.hbm_to_vmem [thread:$0]  %s33_s23, 8192, %s35_s25, [#allocation7], %s2107_s29, %s2107_s29, %s2108_s30  }
   0x7   :  { %s61_s8 = sshll.u32 %s2109_s7, 4  ;;  %s19_s11 = sshll.u32 %s3098_s0, 4  ;;  %s62_s8 = int_to_ptr.vmem [resolvable:$true] %s61_s8  ;;  %s20_s11 = int_to_ptr.hbm [resolvable:$true] %s19_s11 }
   0x8   :  { %64 = dma.hbm_to_vmem [thread:$0]  %s60_s28, 64, %s62_s8, [#allocation10]  }
   0x9   :  { %s2110_s1 = smov [#allocation3]   ;;  %s45_s3 = sshll.u32 %s3100_s2, 4  ;;  %s46_s3 = int_to_ptr.hbm [resolvable:$true] %s45_s3 }
   0xa   :  { %s21_s12 = sshll.u32 %s2110_s1, 4  ;;  %s2111_s15 = smov 128   ;;  %s22_s12 = int_to_ptr.vmem [resolvable:$true] %s21_s12 }
   0xb   :  { %s2112_s16 = smov 8   ;;  %s2113_s17 = smov [#allocation8]  }
   0xc   :  { %27 = dma.hbm_to_vmem [thread:$0]  %s20_s11, 1024, %s22_s12, [#allocation4], %s2111_s15, %s2111_s15, %s2112_s16  }
   0xd   :  { %s47_s18 = sshll.u32 %s2113_s17, 4  ;;  %s69_s0 = sshll.u32 %s3102_s4, 4  ;;  %s48_s18 = int_to_ptr.vmem [resolvable:$true] %s47_s18  ;;  %s70_s0 = int_to_ptr.hbm [resolvable:$true] %s69_s0 }
   0xe   :  { %53 = dma.hbm_to_vmem [thread:$0]  %s46_s3, 8192, %s48_s18, [#allocation7], %s2107_s29, %s2107_s29, %s2108_s30  }
   0xf   :  { %s2114_s21 = smov [#allocation11]  }
  0x10   :  { %s71_s22 = sshll.u32 %s2114_s21, 4  ;;  %s72_s22 = int_to_ptr.vmem [resolvable:$true] %s71_s22 }
  0x11   :  { %77 = dma.hbm_to_vmem [thread:$0]  %s70_s0, 2048, %s72_s22, [#allocation10], %s2111_s15, %s2111_s15, %s2112_s16  }
  0x12   :  { %2098 = dma.done.wait [#allocation4], 1024  }
  0x13   :  { %2099 = vsyncadd [#allocation4], 4294966272 }
  0x14   :  { %2100 = dma.done.wait [#allocation7], 16384  }
  0x15   :  { %2101 = vsyncadd [#allocation7], 4294950912 }
  0x16   :  { %2102 = dma.done.wait [#allocation10], 2112  }
  0x17   :  { %2103 = vsyncadd [#allocation10], 4294965184  ;;  %v168_v0 = vld [vmem:[#allocation6 + $0x1e0] sm:$0xff]  ;;  %v169_v1 = vld [vmem:[#allocation6 + $0x1e8] sm:$0xff]  ;;  %s2116_s23 = smov [#allocation12]   ;;  %s1714_s27 = sshll.u32 %s3104_s6, 4  ;;  %s1715_s27 = int_to_ptr.hbm [resolvable:$true] %s1714_s27 }
  0x18   :  { %v170_v2 = vld [vmem:[#allocation6 + $0x1f0] sm:$0xff]  ;;  %182 = vmatpush.msra.mxu0 %v168_v0  ;;  %223 = vmatpush.msra.mxu1 %v169_v1  ;;  %v171_v3 = vld [vmem:[#allocation6 + $0x1f8] sm:$0xff]  ;;  %v164_v4 = vld [vmem:[#allocation6 + $0x1c0] sm:$0xff]  ;;  %s1712_s24 = sshll.u32 %s2116_s23, 4  ;;  %s1713_s24 = int_to_ptr.vmem [resolvable:$true] %s1712_s24 }
  0x19   :  { %v165_v5 = vld [vmem:[#allocation6 + $0x1c8] sm:$0xff]  ;;  %264 = vmatpush.msra.mxu2 %v170_v2  ;;  %305 = vmatpush.msra.mxu3 %v171_v3  ;;  %v166_v6 = vld [vmem:[#allocation6 + $0x1d0] sm:$0xff]  ;;  %v167_v7 = vld [vmem:[#allocation6 + $0x1d8] sm:$0xff] }
  0x1a   :  { %v160_v8 = vld [vmem:[#allocation6 + $0x1a0] sm:$0xff]  ;;  %183 = vmatpush.msra.mxu0 %v164_v4  ;;  %224 = vmatpush.msra.mxu1 %v165_v5  ;;  %v161_v9 = vld [vmem:[#allocation6 + $0x1a8] sm:$0xff]  ;;  %v162_v10 = vld [vmem:[#allocation6 + $0x1b0] sm:$0xff] }
  0x1b   :  { %v163_v11 = vld [vmem:[#allocation6 + $0x1b8] sm:$0xff]  ;;  %265 = vmatpush.msra.mxu2 %v166_v6  ;;  %306 = vmatpush.msra.mxu3 %v167_v7  ;;  %v156_v12 = vld [vmem:[#allocation6 + $0x180] sm:$0xff]  ;;  %v157_v13 = vld [vmem:[#allocation6 + $0x188] sm:$0xff] }
  0x1c   :  { %184 = vmatpush.msra.mxu0 %v160_v8  ;;  %225 = vmatpush.msra.mxu1 %v161_v9  ;;  %v158_v14 = vld [vmem:[#allocation6 + $0x190] sm:$0xff]  ;;  %v159_v15 = vld [vmem:[#allocation6 + $0x198] sm:$0xff]  ;;  %v152_v16 = vld [vmem:[#allocation6 + $0x160] sm:$0xff] }
  0x1d   :  { %266 = vmatpush.msra.mxu2 %v162_v10  ;;  %307 = vmatpush.msra.mxu3 %v163_v11  ;;  %v153_v17 = vld [vmem:[#allocation6 + $0x168] sm:$0xff]  ;;  %v154_v18 = vld [vmem:[#allocation6 + $0x170] sm:$0xff]  ;;  %v155_v19 = vld [vmem:[#allocation6 + $0x178] sm:$0xff] }
  0x1e   :  { %185 = vmatpush.msra.mxu0 %v156_v12  ;;  %226 = vmatpush.msra.mxu1 %v157_v13  ;;  %v148_v20 = vld [vmem:[#allocation6 + $0x140] sm:$0xff]  ;;  %v149_v21 = vld [vmem:[#allocation6 + $0x148] sm:$0xff]  ;;  %v150_v22 = vld [vmem:[#allocation6 + $0x150] sm:$0xff] }
  0x1f   :  { %267 = vmatpush.msra.mxu2 %v158_v14  ;;  %308 = vmatpush.msra.mxu3 %v159_v15  ;;  %v151_v23 = vld [vmem:[#allocation6 + $0x158] sm:$0xff]  ;;  %v144_v24 = vld [vmem:[#allocation6 + $0x120] sm:$0xff]  ;;  %v145_v25 = vld [vmem:[#allocation6 + $0x128] sm:$0xff] }
  0x20   :  { %186 = vmatpush.msra.mxu0 %v152_v16  ;;  %227 = vmatpush.msra.mxu1 %v153_v17  ;;  %v146_v26 = vld [vmem:[#allocation6 + $0x130] sm:$0xff]  ;;  %v147_v27 = vld [vmem:[#allocation6 + $0x138] sm:$0xff]  ;;  %v140_v28 = vld [vmem:[#allocation6 + $0x100] sm:$0xff] }
  0x21   :  { %268 = vmatpush.msra.mxu2 %v154_v18  ;;  %309 = vmatpush.msra.mxu3 %v155_v19  ;;  %v141_v29 = vld [vmem:[#allocation6 + $0x108] sm:$0xff]  ;;  %v142_v30 = vld [vmem:[#allocation6 + $0x110] sm:$0xff]  ;;  %v143_v31 = vld [vmem:[#allocation6 + $0x118] sm:$0xff] }
  0x22   :  { %187 = vmatpush.msra.mxu0 %v148_v20  ;;  %228 = vmatpush.msra.mxu1 %v149_v21  ;;  %v136_v32 = vld [vmem:[#allocation6 + $0xe0] sm:$0xff]  ;;  %v137_v33 = vld [vmem:[#allocation6 + $0xe8] sm:$0xff]  ;;  %v138_v34 = vld [vmem:[#allocation6 + $0xf0] sm:$0xff] }
  0x23   :  { %269 = vmatpush.msra.mxu2 %v150_v22  ;;  %310 = vmatpush.msra.mxu3 %v151_v23  ;;  %v139_v35 = vld [vmem:[#allocation6 + $0xf8] sm:$0xff]  ;;  %v132_v36 = vld [vmem:[#allocation6 + $0xc0] sm:$0xff]  ;;  %v133_v37 = vld [vmem:[#allocation6 + $0xc8] sm:$0xff] }
  0x24   :  { %188 = vmatpush.msra.mxu0 %v144_v24  ;;  %229 = vmatpush.msra.mxu1 %v145_v25  ;;  %v134_v38 = vld [vmem:[#allocation6 + $0xd0] sm:$0xff]  ;;  %v135_v39 = vld [vmem:[#allocation6 + $0xd8] sm:$0xff]  ;;  %v128_v40 = vld [vmem:[#allocation6 + $0xa0] sm:$0xff] }
  0x25   :  { %270 = vmatpush.msra.mxu2 %v146_v26  ;;  %311 = vmatpush.msra.mxu3 %v147_v27  ;;  %v129_v41 = vld [vmem:[#allocation6 + $0xa8] sm:$0xff]  ;;  %v130_v42 = vld [vmem:[#allocation6 + $0xb0] sm:$0xff]  ;;  %v131_v43 = vld [vmem:[#allocation6 + $0xb8] sm:$0xff] }
  0x26   :  { %189 = vmatpush.msra.mxu0 %v140_v28  ;;  %230 = vmatpush.msra.mxu1 %v141_v29  ;;  %v124_v44 = vld [vmem:[#allocation6 + $0x80] sm:$0xff]  ;;  %v125_v45 = vld [vmem:[#allocation6 + $0x88] sm:$0xff]  ;;  %v126_v46 = vld [vmem:[#allocation6 + $0x90] sm:$0xff] }
  0x27   :  { %271 = vmatpush.msra.mxu2 %v142_v30  ;;  %312 = vmatpush.msra.mxu3 %v143_v31  ;;  %v127_v47 = vld [vmem:[#allocation6 + $0x98] sm:$0xff]  ;;  %v120_v48 = vld [vmem:[#allocation6 + $0x60] sm:$0xff]  ;;  %v121_v49 = vld [vmem:[#allocation6 + $0x68] sm:$0xff] }
  0x28   :  { %190 = vmatpush.msra.mxu0 %v136_v32  ;;  %231 = vmatpush.msra.mxu1 %v137_v33  ;;  %v122_v50 = vld [vmem:[#allocation6 + $0x70] sm:$0xff]  ;;  %v123_v51 = vld [vmem:[#allocation6 + $0x78] sm:$0xff]  ;;  %v116_v52 = vld [vmem:[#allocation6 + $0x40] sm:$0xff] }
  0x29   :  { %272 = vmatpush.msra.mxu2 %v138_v34  ;;  %313 = vmatpush.msra.mxu3 %v139_v35  ;;  %v117_v53 = vld [vmem:[#allocation6 + $0x48] sm:$0xff]  ;;  %v118_v54 = vld [vmem:[#allocation6 + $0x50] sm:$0xff]  ;;  %v119_v55 = vld [vmem:[#allocation6 + $0x58] sm:$0xff] }
  0x2a   :  { %191 = vmatpush.msra.mxu0 %v132_v36  ;;  %232 = vmatpush.msra.mxu1 %v133_v37  ;;  %v112_v56 = vld [vmem:[#allocation6 + $0x20] sm:$0xff]  ;;  %v113_v57 = vld [vmem:[#allocation6 + $0x28] sm:$0xff]  ;;  %v114_v58 = vld [vmem:[#allocation6 + $0x30] sm:$0xff] }
  0x2b   :  { %273 = vmatpush.msra.mxu2 %v134_v38  ;;  %314 = vmatpush.msra.mxu3 %v135_v39  ;;  %v115_v59 = vld [vmem:[#allocation6 + $0x38] sm:$0xff]  ;;  %v108_v60 = vld [vmem:[#allocation6] sm:$0xff]  ;;  %v109_v61 = vld [vmem:[#allocation6 + $0x8] sm:$0xff] }
  0x2c   :  { %192 = vmatpush.msra.mxu0 %v128_v40  ;;  %233 = vmatpush.msra.mxu1 %v129_v41  ;;  %v110_v62 = vld [vmem:[#allocation6 + $0x10] sm:$0xff]  ;;  %v111_v63 = vld [vmem:[#allocation6 + $0x18] sm:$0xff]  ;;  %v100_v0 = vld [vmem:[#allocation3] sm:$0xff] }
  0x2d   :  { %274 = vmatpush.msra.mxu2 %v130_v42  ;;  %315 = vmatpush.msra.mxu3 %v131_v43  ;;  %v2167_v1 = vld [vmem:[#allocation8 + $0x1e0] sm:$0xff]  ;;  %v2169_v2 = vld [vmem:[#allocation8 + $0x1e8] sm:$0xff]  ;;  %v2171_v3 = vld [vmem:[#allocation8 + $0x1f8] sm:$0xff] }
  0x2e   :  { %193 = vmatpush.msra.mxu0 %v124_v44  ;;  %234 = vmatpush.msra.mxu1 %v125_v45  ;;  %v2173_v4 = vld [vmem:[#allocation8 + $0x1f0] sm:$0xff]  ;;  %v2175_v5 = vld [vmem:[#allocation8 + $0x1c0] sm:$0xff]  ;;  %v2177_v6 = vld [vmem:[#allocation8 + $0x1c8] sm:$0xff] }
  0x2f   :  { %275 = vmatpush.msra.mxu2 %v126_v46  ;;  %316 = vmatpush.msra.mxu3 %v127_v47  ;;  %v2181_v7 = vld [vmem:[#allocation8 + $0x1d8] sm:$0xff]  ;;  %v2183_v8 = vld [vmem:[#allocation8 + $0x1d0] sm:$0xff]  ;;  %v2186_v9 = vld [vmem:[#allocation8 + $0x1a0] sm:$0xff] }
  0x30   :  { %194 = vmatpush.msra.mxu0 %v120_v48  ;;  %235 = vmatpush.msra.mxu1 %v121_v49  ;;  %v2188_v10 = vld [vmem:[#allocation8 + $0x1a8] sm:$0xff]  ;;  %v2193_v11 = vld [vmem:[#allocation8 + $0x1b8] sm:$0xff]  ;;  %v2195_v12 = vld [vmem:[#allocation8 + $0x1b0] sm:$0xff] }
  0x31   :  { %276 = vmatpush.msra.mxu2 %v122_v50  ;;  %317 = vmatpush.msra.mxu3 %v123_v51  ;;  %v101_v13 = vld [vmem:[#allocation3 + $0x8] sm:$0xff]  ;;  %v2201_v14 = vld [vmem:[#allocation8 + $0x180] sm:$0xff]  ;;  %v2207_v16 = vld [vmem:[#allocation8 + $0x198] sm:$0xff] }
  0x32   :  { %195 = vmatpush.msra.mxu0 %v116_v52  ;;  %236 = vmatpush.msra.mxu1 %v117_v53  ;;  %v2203_v15 = vld [vmem:[#allocation8 + $0x188] sm:$0xff]  ;;  %v2209_v17 = vld [vmem:[#allocation8 + $0x190] sm:$0xff]  ;;  %v2211_v18 = vld [vmem:[#allocation8 + $0x160] sm:$0xff] }
  0x33   :  { %277 = vmatpush.msra.mxu2 %v118_v54  ;;  %318 = vmatpush.msra.mxu3 %v119_v55  ;;  %v2213_v19 = vld [vmem:[#allocation8 + $0x168] sm:$0xff]  ;;  %v2217_v20 = vld [vmem:[#allocation8 + $0x178] sm:$0xff]  ;;  %v2219_v21 = vld [vmem:[#allocation8 + $0x170] sm:$0xff] }
  0x34   :  { %196 = vmatpush.msra.mxu0 %v112_v56  ;;  %237 = vmatpush.msra.mxu1 %v113_v57  ;;  %v2222_v22 = vld [vmem:[#allocation8 + $0x140] sm:$0xff]  ;;  %v2224_v23 = vld [vmem:[#allocation8 + $0x148] sm:$0xff]  ;;  %v2229_v24 = vld [vmem:[#allocation8 + $0x158] sm:$0xff] }
  0x35   :  { %278 = vmatpush.msra.mxu2 %v114_v58  ;;  %319 = vmatpush.msra.mxu3 %v115_v59  ;;  %v2231_v25 = vld [vmem:[#allocation8 + $0x150] sm:$0xff]  ;;  %v2237_v27 = vld [vmem:[#allocation8 + $0x120] sm:$0xff]  ;;  %v2239_v28 = vld [vmem:[#allocation8 + $0x128] sm:$0xff] }
  0x36   :  { %197 = vmatpush.msra.mxu0 %v108_v60  ;;  %238 = vmatpush.msra.mxu1 %v109_v61  ;;  %v102_v26 = vld [vmem:[#allocation3 + $0x10] sm:$0xff]  ;;  %v2243_v29 = vld [vmem:[#allocation8 + $0x138] sm:$0xff]  ;;  %v2247_v31 = vld [vmem:[#allocation8 + $0x100] sm:$0xff] }
  0x37   :  { %279 = vmatpush.msra.mxu2 %v110_v62  ;;  %320 = vmatpush.msra.mxu3 %v111_v63  ;;  %v2245_v30 = vld [vmem:[#allocation8 + $0x130] sm:$0xff]  ;;  %v2249_v32 = vld [vmem:[#allocation8 + $0x108] sm:$0xff]  ;;  %v2253_v33 = vld [vmem:[#allocation8 + $0x118] sm:$0xff] }
  0x38   :  { %198 = vmatmul.f32.vlgmr.msra.gmra.mxu0 %v100_v0  ;;  %239 = vmatmul.f32.vlgmr.msra.gmra.mxu1 %v100_v0  ;;  %v2255_v34 = vld [vmem:[#allocation8 + $0x110] sm:$0xff]  ;;  %v2258_v35 = vld [vmem:[#allocation8 + $0xe0] sm:$0xff]  ;;  %v2260_v36 = vld [vmem:[#allocation8 + $0xe8] sm:$0xff] }
  0x39   :  { %280 = vmatmul.f32.vlgmr.msra.gmra.mxu2 %v100_v0  ;;  %321 = vmatmul.f32.vlgmr.msra.gmra.mxu3 %v100_v0  ;;  %v2265_v37 = vld [vmem:[#allocation8 + $0xf8] sm:$0xff]  ;;  %v2267_v38 = vld [vmem:[#allocation8 + $0xf0] sm:$0xff]  ;;  %v2273_v40 = vld [vmem:[#allocation8 + $0xc0] sm:$0xff] }
  0x3a   :  { %446 = vmatpush.msrb.mxu0 %v2167_v1  ;;  %466 = vmatpush.msrb.mxu1 %v2169_v2  ;;  %v103_v39 = vld [vmem:[#allocation3 + $0x18] sm:$0xff]  ;;  %v2275_v41 = vld [vmem:[#allocation8 + $0xc8] sm:$0xff]  ;;  %v2281_v43 = vld [vmem:[#allocation8 + $0xd0] sm:$0xff] }
  0x3b   :  { %506 = vmatpush.msrb.mxu3 %v2171_v3  ;;  %486 = vmatpush.msrb.mxu2 %v2173_v4  ;;  %v2279_v42 = vld [vmem:[#allocation8 + $0xd8] sm:$0xff]  ;;  %3197 = vst [vmem:[#allocation18_spill] sm:$0xff] %v2281_v43  ;;  %v2283_v44 = vld [vmem:[#allocation8 + $0xa0] sm:$0xff]  ;;  %v2285_v45 = vld [vmem:[#allocation8 + $0xa8] sm:$0xff] }
  0x3c   :  { %447 = vmatpush.msrb.mxu0 %v2175_v5  ;;  %467 = vmatpush.msrb.mxu1 %v2177_v6  ;;  %3196 = vst [vmem:[#allocation17_spill] sm:$0xff] %v2279_v42  ;;  %v2289_v46 = vld [vmem:[#allocation8 + $0xb8] sm:$0xff]  ;;  %v2291_v47 = vld [vmem:[#allocation8 + $0xb0] sm:$0xff]  ;;  %v2294_v48 = vld [vmem:[#allocation8 + $0x80] sm:$0xff] }
  0x3d   :  { %507 = vmatpush.msrb.mxu3 %v2181_v7  ;;  %487 = vmatpush.msrb.mxu2 %v2183_v8  ;;  %3198 = vst [vmem:[#allocation19_spill] sm:$0xff] %v2283_v44  ;;  %v2296_v49 = vld [vmem:[#allocation8 + $0x88] sm:$0xff]  ;;  %v2301_v50 = vld [vmem:[#allocation8 + $0x98] sm:$0xff]  ;;  %v2303_v51 = vld [vmem:[#allocation8 + $0x90] sm:$0xff] }
  0x3e   :  { %448 = vmatpush.msrb.mxu0 %v2186_v9  ;;  %468 = vmatpush.msrb.mxu1 %v2188_v10  ;;  %3199 = vst [vmem:[#allocation20_spill] sm:$0xff] %v2285_v45  ;;  %v104_v52 = vld [vmem:[#allocation3 + $0x20] sm:$0xff]  ;;  %v2311_v54 = vld [vmem:[#allocation8 + $0x68] sm:$0xff]  ;;  %v2315_v55 = vld [vmem:[#allocation8 + $0x78] sm:$0xff] }
  0x3f   :  { %508 = vmatpush.msrb.mxu3 %v2193_v11  ;;  %488 = vmatpush.msrb.mxu2 %v2195_v12  ;;  %3200 = vst [vmem:[#allocation21_spill] sm:$0xff] %v2289_v46  ;;  %v2309_v53 = vld [vmem:[#allocation8 + $0x60] sm:$0xff]  ;;  %v2317_v56 = vld [vmem:[#allocation8 + $0x70] sm:$0xff]  ;;  %v2321_v58 = vld [vmem:[#allocation8 + $0x48] sm:$0xff] }
  0x40   :  { %201 = vmatmul.f32.gmra.mxu0 %v101_v13  ;;  %242 = vmatmul.f32.gmra.mxu1 %v101_v13  ;;  %3201 = vst [vmem:[#allocation22_spill] sm:$0xff] %v2291_v47  ;;  %v2319_v57 = vld [vmem:[#allocation8 + $0x40] sm:$0xff]  ;;  %v2325_v59 = vld [vmem:[#allocation8 + $0x58] sm:$0xff]  ;;  %v2327_v60 = vld [vmem:[#allocation8 + $0x50] sm:$0xff] }
  0x41   :  { %283 = vmatmul.f32.gmra.mxu2 %v101_v13  ;;  %324 = vmatmul.f32.gmra.mxu3 %v101_v13  ;;  %3202 = vst [vmem:[#allocation23_spill] sm:$0xff] %v2294_v48  ;;  %v2330_v61 = vld [vmem:[#allocation8 + $0x20] sm:$0xff]  ;;  %v2332_v62 = vld [vmem:[#allocation8 + $0x28] sm:$0xff]  ;;  %v2337_v63 = vld [vmem:[#allocation8 + $0x30] sm:$0xff] }
  0x42   :  { %449 = vmatpush.msrb.mxu0 %v2201_v14  ;;  %469 = vmatpush.msrb.mxu1 %v2203_v15  ;;  %3203 = vst [vmem:[#allocation24_spill] sm:$0xff] %v2296_v49  ;;  %v2339_v0 = vld [vmem:[#allocation8 + $0x38] sm:$0xff]  ;;  %v105_v13 = vld [vmem:[#allocation3 + $0x28] sm:$0xff] }
  0x43   :  { %509 = vmatpush.msrb.mxu3 %v2207_v16  ;;  %489 = vmatpush.msrb.mxu2 %v2209_v17  ;;  %3204 = vst [vmem:[#allocation25_spill] sm:$0xff] %v2301_v50 }
  0x44   :  { %450 = vmatpush.msrb.mxu0 %v2211_v18  ;;  %470 = vmatpush.msrb.mxu1 %v2213_v19  ;;  %3205 = vst [vmem:[#allocation26_spill] sm:$0xff] %v2303_v51 }
  0x45   :  { %510 = vmatpush.msrb.mxu3 %v2217_v20  ;;  %490 = vmatpush.msrb.mxu2 %v2219_v21  ;;  %3206 = vst [vmem:[#allocation27_spill] sm:$0xff] %v2309_v53 }
  0x46   :  { %451 = vmatpush.msrb.mxu0 %v2222_v22  ;;  %471 = vmatpush.msrb.mxu1 %v2224_v23  ;;  %3207 = vst [vmem:[#allocation28_spill] sm:$0xff] %v2311_v54 }
  0x47   :  { %511 = vmatpush.msrb.mxu3 %v2229_v24  ;;  %491 = vmatpush.msrb.mxu2 %v2231_v25  ;;  %3208 = vst [vmem:[#allocation29_spill] sm:$0xff] %v2315_v55 }
  0x48   :  { %204 = vmatmul.f32.gmra.mxu0 %v102_v26  ;;  %245 = vmatmul.f32.gmra.mxu1 %v102_v26  ;;  %3209 = vst [vmem:[#allocation30_spill] sm:$0xff] %v2317_v56 }
  0x49   :  { %286 = vmatmul.f32.gmra.mxu2 %v102_v26  ;;  %327 = vmatmul.f32.gmra.mxu3 %v102_v26  ;;  %3210 = vst [vmem:[#allocation31_spill] sm:$0xff] %v2319_v57  ;;  %v2345_v26 = vld [vmem:[#allocation8] sm:$0xff] }
  0x4a   :  { %452 = vmatpush.msrb.mxu0 %v2237_v27  ;;  %472 = vmatpush.msrb.mxu1 %v2239_v28  ;;  %3211 = vst [vmem:[#allocation32_spill] sm:$0xff] %v2321_v58 }
  0x4b   :  { %512 = vmatpush.msrb.mxu3 %v2243_v29  ;;  %492 = vmatpush.msrb.mxu2 %v2245_v30  ;;  %3212 = vst [vmem:[#allocation33_spill] sm:$0xff] %v2325_v59 }
  0x4c   :  { %453 = vmatpush.msrb.mxu0 %v2247_v31  ;;  %473 = vmatpush.msrb.mxu1 %v2249_v32  ;;  %3213 = vst [vmem:[#allocation34_spill] sm:$0xff] %v2327_v60 }
  0x4d   :  { %513 = vmatpush.msrb.mxu3 %v2253_v33  ;;  %493 = vmatpush.msrb.mxu2 %v2255_v34  ;;  %3214 = vst [vmem:[#allocation35_spill] sm:$0xff] %v2330_v61 }
  0x4e   :  { %454 = vmatpush.msrb.mxu0 %v2258_v35  ;;  %474 = vmatpush.msrb.mxu1 %v2260_v36  ;;  %3215 = vst [vmem:[#allocation36_spill] sm:$0xff] %v2332_v62 }
  0x4f   :  { %514 = vmatpush.msrb.mxu3 %v2265_v37  ;;  %494 = vmatpush.msrb.mxu2 %v2267_v38  ;;  %3216 = vst [vmem:[#allocation37_spill] sm:$0xff] %v2337_v63 }
  0x50   :  { %207 = vmatmul.f32.gmra.mxu0 %v103_v39  ;;  %248 = vmatmul.f32.gmra.mxu1 %v103_v39  ;;  %3217 = vst [vmem:[#allocation38_spill] sm:$0xff] %v2339_v0 }
  0x51   :  { %289 = vmatmul.f32.gmra.mxu2 %v103_v39  ;;  %330 = vmatmul.f32.gmra.mxu3 %v103_v39  ;;  %3218 = vst [vmem:[#allocation39_spill] sm:$0xff] %v2345_v26  ;;  %v2347_v39 = vld [vmem:[#allocation8 + $0x8] sm:$0xff] }
  0x52   :  { %455 = vmatpush.msrb.mxu0 %v2273_v40  ;;  %475 = vmatpush.msrb.mxu1 %v2275_v41  ;;  %3219 = vst [vmem:[#allocation40_spill] sm:$0xff] %v2347_v39 }
  0x53   :  { %515 = vmatpush.msrb.mxu3 %v2279_v42  ;;  %495 = vmatpush.msrb.mxu2 %v2281_v43 }
  0x54   :  { %456 = vmatpush.msrb.mxu0 %v2283_v44  ;;  %476 = vmatpush.msrb.mxu1 %v2285_v45 }
  0x55   :  { %516 = vmatpush.msrb.mxu3 %v2289_v46  ;;  %496 = vmatpush.msrb.mxu2 %v2291_v47 }
  0x56   :  { %457 = vmatpush.msrb.mxu0 %v2294_v48  ;;  %477 = vmatpush.msrb.mxu1 %v2296_v49 }
  0x57   :  { %517 = vmatpush.msrb.mxu3 %v2301_v50  ;;  %497 = vmatpush.msrb.mxu2 %v2303_v51 }
  0x58   :  { %210 = vmatmul.f32.gmra.mxu0 %v104_v52  ;;  %251 = vmatmul.f32.gmra.mxu1 %v104_v52 }
  0x59   :  { %292 = vmatmul.f32.gmra.mxu2 %v104_v52  ;;  %333 = vmatmul.f32.gmra.mxu3 %v104_v52  ;;  %v2351_v52 = vld [vmem:[#allocation8 + $0x10] sm:$0xff] }
  0x5a   :  { %458 = vmatpush.msrb.mxu0 %v2309_v53  ;;  %478 = vmatpush.msrb.mxu1 %v2311_v54  ;;  %3220 = vst [vmem:[#allocation41_spill] sm:$0xff] %v2351_v52 }
  0x5b   :  { %518 = vmatpush.msrb.mxu3 %v2315_v55  ;;  %498 = vmatpush.msrb.mxu2 %v2317_v56 }
  0x5c   :  { %459 = vmatpush.msrb.mxu0 %v2319_v57  ;;  %479 = vmatpush.msrb.mxu1 %v2321_v58  ;;  %v2353_v58 = vld [vmem:[#allocation8 + $0x18] sm:$0xff] }
  0x5d   :  { %519 = vmatpush.msrb.mxu3 %v2325_v59  ;;  %499 = vmatpush.msrb.mxu2 %v2327_v60  ;;  %3221 = vst [vmem:[#allocation42_spill] sm:$0xff] %v2353_v58 }
  0x5e   :  { %460 = vmatpush.msrb.mxu0 %v2330_v61  ;;  %480 = vmatpush.msrb.mxu1 %v2332_v62 }
  0x5f   :  { %500 = vmatpush.msrb.mxu2 %v2337_v63  ;;  %520 = vmatpush.msrb.mxu3 %v2339_v0  ;;  %v106_v0 = vld [vmem:[#allocation3 + $0x30] sm:$0xff] }
  0x60   :  { %213 = vmatmul.f32.gmra.mxu0 %v105_v13  ;;  %254 = vmatmul.f32.gmra.mxu1 %v105_v13 }
  0x61   :  { %295 = vmatmul.f32.gmra.mxu2 %v105_v13  ;;  %336 = vmatmul.f32.gmra.mxu3 %v105_v13  ;;  %v107_v13 = vld [vmem:[#allocation3 + $0x38] sm:$0xff] }
  0x62   :  { %461 = vmatpush.msrb.mxu0 %v2345_v26  ;;  %481 = vmatpush.msrb.mxu1 %v2347_v39 }
  0x63   :  { %501 = vmatpush.msrb.mxu2 %v2351_v52  ;;  %521 = vmatpush.msrb.mxu3 %v2353_v58 }
  0x64   :  { %599 = vmatpush.msra.mxu0 %v2167_v1  ;;  %619 = vmatpush.msra.mxu1 %v2169_v2 }
  0x65   :  { %639 = vmatpush.msra.mxu2 %v2173_v4  ;;  %659 = vmatpush.msra.mxu3 %v2171_v3 }
  0x66   :  { %600 = vmatpush.msra.mxu0 %v2175_v5  ;;  %620 = vmatpush.msra.mxu1 %v2177_v6 }
  0x67   :  { %640 = vmatpush.msra.mxu2 %v2183_v8  ;;  %660 = vmatpush.msra.mxu3 %v2181_v7 }
  0x68   :  { %216 = vmatmul.f32.gmra.mxu0 %v106_v0  ;;  %257 = vmatmul.f32.gmra.mxu1 %v106_v0 }
  0x69   :  { %298 = vmatmul.f32.gmra.mxu2 %v106_v0  ;;  %339 = vmatmul.f32.gmra.mxu3 %v106_v0  ;;  %v2115_v0 = vmov 0.0  }
  0x6a   :  { %601 = vmatpush.msra.mxu0 %v2186_v9  ;;  %621 = vmatpush.msra.mxu1 %v2188_v10 }
  0x6b   :  { %641 = vmatpush.msra.mxu2 %v2195_v12  ;;  %661 = vmatpush.msra.mxu3 %v2193_v11 }
  0x6c   :  { %602 = vmatpush.msra.mxu0 %v2201_v14  ;;  %622 = vmatpush.msra.mxu1 %v2203_v15 }
  0x6d   :  { %642 = vmatpush.msra.mxu2 %v2209_v17  ;;  %662 = vmatpush.msra.mxu3 %v2207_v16 }
  0x6e   :  { %603 = vmatpush.msra.mxu0 %v2211_v18  ;;  %623 = vmatpush.msra.mxu1 %v2213_v19 }
  0x6f   :  { %643 = vmatpush.msra.mxu2 %v2219_v21  ;;  %663 = vmatpush.msra.mxu3 %v2217_v20 }
  0x70   :  { %219 = vmatmul.f32.gmra.mxu0 %v107_v13  ;;  %260 = vmatmul.f32.gmra.mxu1 %v107_v13 }
  0x71   :  { %301 = vmatmul.f32.gmra.mxu2 %v107_v13  ;;  %342 = vmatmul.f32.gmra.mxu3 %v107_v13  ;;  %v3222_v13 = vld [vmem:[#allocation32_spill] sm:$0xff] }
  0x72   :  { %604 = vmatpush.msra.mxu0 %v2222_v22  ;;  %624 = vmatpush.msra.mxu1 %v2224_v23 }
  0x73   :  { %644 = vmatpush.msra.mxu2 %v2231_v25  ;;  %664 = vmatpush.msra.mxu3 %v2229_v24 }
  0x74   :  { %605 = vmatpush.msra.mxu0 %v2237_v27  ;;  %625 = vmatpush.msra.mxu1 %v2239_v28 }
  0x75   :  { %645 = vmatpush.msra.mxu2 %v2245_v30  ;;  %665 = vmatpush.msra.mxu3 %v2243_v29 }
  0x76   :  { %606 = vmatpush.msra.mxu0 %v2247_v31  ;;  %626 = vmatpush.msra.mxu1 %v2249_v32 }
  0x77   :  { %646 = vmatpush.msra.mxu2 %v2255_v34  ;;  %666 = vmatpush.msra.mxu3 %v2253_v33 }
  0x78   :  { %462 = vmatmul.f32.vlgmr.msrb.gmra.mxu0 %v2115_v0  ;;  %482 = vmatmul.f32.vlgmr.msrb.gmra.mxu1 %v2115_v0 }
  0x79   :  { %502 = vmatmul.f32.vlgmr.msrb.gmra.mxu2 %v2115_v0  ;;  %522 = vmatmul.f32.vlgmr.msrb.gmra.mxu3 %v2115_v0  ;;  %v3223_v0 = vld [vmem:[#allocation38_spill] sm:$0xff] }
  0x7a   :  { %607 = vmatpush.msra.mxu0 %v2258_v35  ;;  %627 = vmatpush.msra.mxu1 %v2260_v36 }
  0x7b   :  { %647 = vmatpush.msra.mxu2 %v2267_v38  ;;  %667 = vmatpush.msra.mxu3 %v2265_v37 }
  0x7c   :  { %608 = vmatpush.msra.mxu0 %v2273_v40  ;;  %628 = vmatpush.msra.mxu1 %v2275_v41 }
  0x7d   :  { %648 = vmatpush.msra.mxu2 %v2281_v43  ;;  %668 = vmatpush.msra.mxu3 %v2279_v42 }
  0x7e   :  { %609 = vmatpush.msra.mxu0 %v2283_v44  ;;  %629 = vmatpush.msra.mxu1 %v2285_v45 }
  0x7f   :  { %649 = vmatpush.msra.mxu2 %v2291_v47  ;;  %669 = vmatpush.msra.mxu3 %v2289_v46 }
  0x80   :  { %610 = vmatpush.msra.mxu0 %v2294_v48  ;;  %630 = vmatpush.msra.mxu1 %v2296_v49 }
  0x81   :  { %650 = vmatpush.msra.mxu2 %v2303_v51  ;;  %670 = vmatpush.msra.mxu3 %v2301_v50 }
  0x82   :  { %611 = vmatpush.msra.mxu0 %v2309_v53  ;;  %631 = vmatpush.msra.mxu1 %v2311_v54 }
  0x83   :  { %651 = vmatpush.msra.mxu2 %v2317_v56  ;;  %671 = vmatpush.msra.mxu3 %v2315_v55 }
  0x84   :  { %612 = vmatpush.msra.mxu0 %v2319_v57  ;;  %632 = vmatpush.msra.mxu1 %v3222_v13 }
  0x85   :  { %652 = vmatpush.msra.mxu2 %v2327_v60  ;;  %672 = vmatpush.msra.mxu3 %v2325_v59 }
  0x86   :  { %613 = vmatpush.msra.mxu0 %v2330_v61  ;;  %633 = vmatpush.msra.mxu1 %v2332_v62 }
  0x87   :  { %653 = vmatpush.msra.mxu2 %v2337_v63  ;;  %673 = vmatpush.msra.mxu3 %v3223_v0 }
  0x88   :  { %614 = vmatpush.msra.mxu0 %v2345_v26  ;;  %634 = vmatpush.msra.mxu1 %v2347_v39 }
  0x89   :  { %654 = vmatpush.msra.mxu2 %v2351_v52  ;;  %674 = vmatpush.msra.mxu3 %v2353_v58 }
  0x8a   :  { %752 = vmatpush.msrb.mxu0 %v2167_v1  ;;  %772 = vmatpush.msrb.mxu1 %v2169_v2 }
  0x8b   :  { %792 = vmatpush.msrb.mxu2 %v2173_v4  ;;  %812 = vmatpush.msrb.mxu3 %v2171_v3 }
  0x8c   :  { %753 = vmatpush.msrb.mxu0 %v2175_v5  ;;  %773 = vmatpush.msrb.mxu1 %v2177_v6 }
  0x8d   :  { %793 = vmatpush.msrb.mxu2 %v2183_v8  ;;  %813 = vmatpush.msrb.mxu3 %v2181_v7 }
  0x8e   :  { %754 = vmatpush.msrb.mxu0 %v2186_v9  ;;  %774 = vmatpush.msrb.mxu1 %v2188_v10 }
  0x8f   :  { %794 = vmatpush.msrb.mxu2 %v2195_v12  ;;  %814 = vmatpush.msrb.mxu3 %v2193_v11 }
  0x90   :  { %755 = vmatpush.msrb.mxu0 %v2201_v14  ;;  %775 = vmatpush.msrb.mxu1 %v2203_v15 }
  0x91   :  { %795 = vmatpush.msrb.mxu2 %v2209_v17  ;;  %815 = vmatpush.msrb.mxu3 %v2207_v16 }
  0x92   :  { %756 = vmatpush.msrb.mxu0 %v2211_v18  ;;  %776 = vmatpush.msrb.mxu1 %v2213_v19 }
  0x93   :  { %796 = vmatpush.msrb.mxu2 %v2219_v21  ;;  %816 = vmatpush.msrb.mxu3 %v2217_v20 }
  0x94   :  { %757 = vmatpush.msrb.mxu0 %v2222_v22  ;;  %777 = vmatpush.msrb.mxu1 %v2224_v23 }
  0x95   :  { %797 = vmatpush.msrb.mxu2 %v2231_v25  ;;  %817 = vmatpush.msrb.mxu3 %v2229_v24 }
  0x96   :  { %758 = vmatpush.msrb.mxu0 %v2237_v27  ;;  %778 = vmatpush.msrb.mxu1 %v2239_v28 }
  0x97   :  { %798 = vmatpush.msrb.mxu2 %v2245_v30  ;;  %818 = vmatpush.msrb.mxu3 %v2243_v29 }
  0x98   :  { %759 = vmatpush.msrb.mxu0 %v2247_v31  ;;  %779 = vmatpush.msrb.mxu1 %v2249_v32 }
  0x99   :  { %799 = vmatpush.msrb.mxu2 %v2255_v34  ;;  %819 = vmatpush.msrb.mxu3 %v2253_v33 }
  0x9a   :  { %760 = vmatpush.msrb.mxu0 %v2258_v35  ;;  %780 = vmatpush.msrb.mxu1 %v2260_v36 }
  0x9b   :  { %800 = vmatpush.msrb.mxu2 %v2267_v38  ;;  %820 = vmatpush.msrb.mxu3 %v2265_v37 }
  0x9c   :  { %761 = vmatpush.msrb.mxu0 %v2273_v40  ;;  %781 = vmatpush.msrb.mxu1 %v2275_v41 }
  0x9d   :  { %801 = vmatpush.msrb.mxu2 %v2281_v43  ;;  %821 = vmatpush.msrb.mxu3 %v2279_v42 }
  0x9e   :  { %762 = vmatpush.msrb.mxu0 %v2283_v44  ;;  %782 = vmatpush.msrb.mxu1 %v2285_v45 }
  0x9f   :  { %802 = vmatpush.msrb.mxu2 %v2291_v47  ;;  %822 = vmatpush.msrb.mxu3 %v2289_v46 }
  0xa0   :  { %763 = vmatpush.msrb.mxu0 %v2294_v48  ;;  %783 = vmatpush.msrb.mxu1 %v2296_v49 }
  0xa1   :  { %803 = vmatpush.msrb.mxu2 %v2303_v51  ;;  %823 = vmatpush.msrb.mxu3 %v2301_v50 }
  0xa2   :  { %764 = vmatpush.msrb.mxu0 %v2309_v53  ;;  %784 = vmatpush.msrb.mxu1 %v2311_v54 }
  0xa3   :  { %804 = vmatpush.msrb.mxu2 %v2317_v56  ;;  %824 = vmatpush.msrb.mxu3 %v2315_v55 }
  0xa4   :  { %765 = vmatpush.msrb.mxu0 %v2319_v57  ;;  %785 = vmatpush.msrb.mxu1 %v3222_v13  ;;  %v172_v57 = vld [vmem:[#allocation9] sm:$0xf] }
  0xa5   :  { %805 = vmatpush.msrb.mxu2 %v2327_v60  ;;  %825 = vmatpush.msrb.mxu3 %v2325_v59  ;;  %v174_v59 = vperm.slane %v172_v57, 0  ;;  %v175_v55 = vperm.slane %v172_v57, 1 }
  0xa6   :  { %766 = vmatpush.msrb.mxu0 %v2330_v61  ;;  %786 = vmatpush.msrb.mxu1 %v2332_v62 }
  0xa7   :  { %806 = vmatpush.msrb.mxu2 %v2337_v63  ;;  %826 = vmatpush.msrb.mxu3 %v3223_v0 }
  0xa8   :  { %767 = vmatpush.msrb.mxu0 %v2345_v26  ;;  %787 = vmatpush.msrb.mxu1 %v2347_v39  ;;  %v2495_v39 = vperm.slane %v172_v57, 2 }
  0xa9   :  { %807 = vmatpush.msrb.mxu2 %v2351_v52  ;;  %827 = vmatpush.msrb.mxu3 %v2353_v58  ;;  %v177_v52 = vperm.slane %v172_v57, 3 }
  0xb5   :  { %v199_v13 = vpop.f32.mrf.mxu0  ;;  %v240_v60 = vpop.f32.mrf.mxu1 }
  0xbc   :  { %v2487_v61 = vpop.f32.mrf.mxu2  ;;  %v2489_v62 = vpop.f32.mrf.mxu3 }
  0xbd   :  { %v202_v63 = vpop.f32.mrf.mxu0  ;;  %v243_v56 = vpop.f32.mrf.mxu1 }
  0xbe   :  { %v2491_v0 = vadd.f32 %v202_v63, %v174_v59  ;;  %v2493_v26 = vadd.f32 %v243_v56, %v175_v55 }
  0xc0   :  { %3224 = vst [vmem:[#allocation43_spill] sm:$0xff] %v2491_v0 }
  0xc1   :  { %3225 = vst [vmem:[#allocation44_spill] sm:$0xff] %v2493_v26 }
  0xc4   :  { %v284_v54 = vpop.f32.mrf.mxu2  ;;  %v325_v58 = vpop.f32.mrf.mxu3 }
  0xc5   :  { %v2498_v53 = vadd.f32 %v284_v54, %v2495_v39  ;;  %v2500_v50 = vadd.f32 %v325_v58, %v177_v52  ;;  %v205_v51 = vpop.f32.mrf.mxu0  ;;  %v246_v49 = vpop.f32.mrf.mxu1 }
  0xc6   :  { %v2502_v48 = vadd.f32 %v205_v51, %v174_v59  ;;  %v2504_v46 = vadd.f32 %v246_v49, %v175_v55 }
  0xc7   :  { %3226 = vst [vmem:[#allocation45_spill] sm:$0xff] %v2498_v53 }
  0xc8   :  { %3227 = vst [vmem:[#allocation46_spill] sm:$0xff] %v2500_v50 }
  0xc9   :  { %3228 = vst [vmem:[#allocation47_spill] sm:$0xff] %v2502_v48 }
  0xca   :  { %3229 = vst [vmem:[#allocation48_spill] sm:$0xff] %v2504_v46 }
  0xcc   :  { %v287_v63 = vpop.f32.mrf.mxu2  ;;  %v328_v0 = vpop.f32.mrf.mxu3 }
  0xcd   :  { %v2507_v56 = vadd.f32 %v287_v63, %v2495_v39  ;;  %v2509_v26 = vadd.f32 %v328_v0, %v177_v52  ;;  %v208_v57 = vpop.f32.mrf.mxu0  ;;  %v249_v47 = vpop.f32.mrf.mxu1 }
  0xce   :  { %v2511_v45 = vadd.f32 %v208_v57, %v174_v59  ;;  %v2513_v54 = vadd.f32 %v249_v47, %v175_v55 }
  0xcf   :  { %3230 = vst [vmem:[#allocation49_spill] sm:$0xff] %v2507_v56 }
  0xd0   :  { %3231 = vst [vmem:[#allocation50_spill] sm:$0xff] %v2509_v26 }
  0xd1   :  { %3232 = vst [vmem:[#allocation51_spill] sm:$0xff] %v2511_v45 }
  0xd2   :  { %3233 = vst [vmem:[#allocation52_spill] sm:$0xff] %v2513_v54 }
  0xd4   :  { %v290_v58 = vpop.f32.mrf.mxu2  ;;  %v331_v53 = vpop.f32.mrf.mxu3 }
  0xd5   :  { %v2516_v51 = vadd.f32 %v290_v58, %v2495_v39  ;;  %v2518_v49 = vadd.f32 %v331_v53, %v177_v52  ;;  %v211_v46 = vpop.f32.mrf.mxu0  ;;  %v252_v48 = vpop.f32.mrf.mxu1 }
  0xd6   :  { %v2520_v50 = vadd.f32 %v211_v46, %v174_v59  ;;  %v2522_v63 = vadd.f32 %v252_v48, %v175_v55 }
  0xd7   :  { %3234 = vst [vmem:[#allocation53_spill] sm:$0xff] %v2516_v51 }
  0xd8   :  { %3235 = vst [vmem:[#allocation54_spill] sm:$0xff] %v2518_v49 }
  0xd9   :  { %3236 = vst [vmem:[#allocation55_spill] sm:$0xff] %v2520_v50 }
  0xda   :  { %3237 = vst [vmem:[#allocation56_spill] sm:$0xff] %v2522_v63 }
  0xdc   :  { %v293_v0 = vpop.f32.mrf.mxu2  ;;  %v334_v56 = vpop.f32.mrf.mxu3 }
  0xdd   :  { %v2525_v57 = vadd.f32 %v293_v0, %v2495_v39  ;;  %v2527_v47 = vadd.f32 %v334_v56, %v177_v52  ;;  %v214_v54 = vpop.f32.mrf.mxu0  ;;  %v255_v45 = vpop.f32.mrf.mxu1 }
  0xde   :  { %v2529_v26 = vadd.f32 %v214_v54, %v174_v59  ;;  %v2531_v58 = vadd.f32 %v255_v45, %v175_v55 }
  0xdf   :  { %3238 = vst [vmem:[#allocation57_spill] sm:$0xff] %v2525_v57 }
  0xe0   :  { %3239 = vst [vmem:[#allocation58_spill] sm:$0xff] %v2527_v47 }
  0xe1   :  { %3240 = vst [vmem:[#allocation59_spill] sm:$0xff] %v2529_v26 }
  0xe2   :  { %3241 = vst [vmem:[#allocation60_spill] sm:$0xff] %v2531_v58 }
  0xe4   :  { %v296_v53 = vpop.f32.mrf.mxu2  ;;  %v337_v51 = vpop.f32.mrf.mxu3 }
  0xe5   :  { %v2534_v46 = vadd.f32 %v296_v53, %v2495_v39  ;;  %v2536_v48 = vadd.f32 %v337_v51, %v177_v52  ;;  %v217_v63 = vpop.f32.mrf.mxu0  ;;  %v258_v50 = vpop.f32.mrf.mxu1  ;;  %v200_v51 = vadd.f32 %v199_v13, %v174_v59 }
  0xe6   :  { %v2538_v49 = vadd.f32 %v217_v63, %v174_v59  ;;  %v2540_v0 = vadd.f32 %v258_v50, %v175_v55 }
  0xe7   :  { %3242 = vst [vmem:[#allocation61_spill] sm:$0xff] %v2534_v46  ;;  %v241_v46 = vadd.f32 %v240_v60, %v175_v55 }
  0xe8   :  { %3243 = vst [vmem:[#allocation62_spill] sm:$0xff] %v2536_v48 }
  0xe9   :  { %3244 = vst [vmem:[#allocation63_spill] sm:$0xff] %v2538_v49 }
  0xea   :  { %3245 = vst [vmem:[#allocation64_spill] sm:$0xff] %v2540_v0 }
  0xec   :  { %v299_v56 = vpop.f32.mrf.mxu2  ;;  %v340_v57 = vpop.f32.mrf.mxu3 }
  0xed   :  { %v2543_v54 = vadd.f32 %v299_v56, %v2495_v39  ;;  %v2545_v45 = vadd.f32 %v340_v57, %v177_v52  ;;  %v220_v58 = vpop.f32.mrf.mxu0  ;;  %v261_v26 = vpop.f32.mrf.mxu1 }
  0xee   :  { %v2547_v47 = vadd.f32 %v220_v58, %v174_v59  ;;  %v2549_v53 = vadd.f32 %v261_v26, %v175_v55  ;;  %v323_v58 = vadd.f32 %v2489_v62, %v177_v52 }
  0xef   :  { %3246 = vst [vmem:[#allocation65_spill] sm:$0xff] %v2543_v54 }
  0xf0   :  { %3247 = vst [vmem:[#allocation66_spill] sm:$0xff] %v2545_v45 }
  0xf1   :  { %3248 = vst [vmem:[#allocation67_spill] sm:$0xff] %v2547_v47 }
  0xf2   :  { %3249 = vst [vmem:[#allocation68_spill] sm:$0xff] %v2549_v53 }
  0xf4   :  { %v302_v48 = vpop.f32.mrf.mxu2  ;;  %v343_v63 = vpop.f32.mrf.mxu3 }
  0xf5   :  { %v2552_v50 = vadd.f32 %v302_v48, %v2495_v39  ;;  %v2554_v0 = vadd.f32 %v343_v63, %v177_v52  ;;  %v463_v49 = vpop.f32.mrf.mxu0  ;;  %v483_v56 = vpop.f32.mrf.mxu1 }
  0xf6   :  { %v526_v54 = vadd.f32 %v463_v49, %v200_v51  ;;  %v527_v57 = vadd.f32 %v483_v56, %v241_v46  ;;  %v282_v49 = vadd.f32 %v2487_v61, %v2495_v39 }
  0xf7   :  { %3250 = vst [vmem:[#allocation69_spill] sm:$0xff] %v2552_v50 }
  0xf8   :  { %3251 = vst [vmem:[#allocation70_spill] sm:$0xff] %v2554_v0  ;;  %v1726_v45 = vmul.f32 -1.442695, %v526_v54  ;;  %v1727_v44 = vmul.f32 -1.442695, %v527_v57 }
  0xfa   :  { %1762 = vpow2.f32 %v1726_v45 }
  0xfb   :  { %1764 = vpow2.f32 %v1727_v44 }
  0xfc   :  { %v523_v26 = vpop.f32.mrf.mxu3  ;;  %v503_v63 = vpop.f32.mrf.mxu2 }
  0xfd   :  { %v529_v59 = vadd.f32 %v523_v26, %v323_v58  ;;  %v528_v45 = vadd.f32 %v503_v63, %v282_v49 }
  0xff   :  { %v1728_v55 = vmul.f32 -1.442695, %v529_v59 }
 0x100   :  { %v1763_v60 = vpop.eup %1762 }
 0x101   :  { %v1765_v13 = vpop.eup %1764  ;;  %v533_v53 = vadd.f32 1.0, %v1763_v60  ;;  %1766 = vpow2.f32 %v1728_v55 }
 0x102   :  { %v552_v48 = vadd.f32 1.0, %v1765_v13 }
 0x103   :  { %1768 = vrcp.f32 %v533_v53  ;;  %v545_v57 = vand.u32 2147483648, %v533_v53  ;;  %v543_v59 = vand.u32 2147483647, %v533_v53  ;;  %vm539_vm2 = vweird.f32 %v533_v53 }
 0x104   :  { %1770 = vrcp.f32 %v552_v48  ;;  %v564_v58 = vand.u32 2147483648, %v552_v48  ;;  %v562_v60 = vand.u32 2147483647, %v552_v48  ;;  %vm558_vm3 = vweird.f32 %v552_v48 }
 0x105   :  { %v546_v39 = vor.u32 1.1754944e-38, %v545_v57  ;;  %vm544_vm5 = vcmp.eq.f32.partialorder %v543_v59, 8.507059e+37 }
 0x106   :  { %v565_v49 = vor.u32 1.1754944e-38, %v564_v58  ;;  %vm563_vm7 = vcmp.eq.f32.partialorder %v562_v60, 8.507059e+37 }
 0x107   :  { %v1767_v50 = vpop.eup %1766 }
 0x108   :  { %v572_v46 = vadd.f32 1.0, %v1767_v50 }
 0x109   :  { %v1769_v54 = vpop.eup %1768 }
 0x10a   :  { %v1771_v62 = vpop.eup %1770  ;;  %v535_v44 = vmul.f32 %v1769_v54, %v533_v53  ;;  %1772 = vrcp.f32 %v572_v46  ;;  %vm540_vm0 = vweird.f32 %v1769_v54  ;;  %vm578_vm9 = vweird.f32 %v572_v46 }
 0x10b   :  { %v554_v52 = vmul.f32 %v1771_v62, %v552_v48  ;;  %1774 = vtanh.f32 %v528_v45  ;;  %vm559_vm1 = vweird.f32 %v1771_v62  ;;  %vm541_vm4 = vmor %vm539_vm2, %vm540_vm0  ;;  %v584_v48 = vand.u32 2147483648, %v572_v46 }
 0x10c   :  { %v536_v51 = vsub.f32 1.0, %v535_v44  ;;  %vm560_vm6 = vmor %vm558_vm3, %vm559_vm1 }
 0x10d   :  { %v555_v56 = vsub.f32 1.0, %v554_v52  ;;  %v585_v58 = vor.u32 1.1754944e-38, %v584_v48 }
 0x10e   :  { %v537_v26 = vmul.f32 %v1769_v54, %v536_v51 }
 0x10f   :  { %v556_v55 = vmul.f32 %v1771_v62, %v555_v56 }
 0x110   :  { %v1773_v13 = vpop.eup %1772  ;;  %v538_v61 = vadd.f32 %v1769_v54, %v537_v26 }
 0x111   :  { %v557_v50 = vadd.f32 %v1771_v62, %v556_v55  ;;  %v574_v63 = vmul.f32 %v1773_v13, %v572_v46  ;;  %v1775_v45 = vpop.eup %1774  ;;  %vm579_vm8 = vweird.f32 %v1773_v13 }
 0x112   :  { %v542_v44 = vsel %vm541_vm4, %v1769_v54, %v538_v61  ;;  %v582_v54 = vand.u32 2147483647, %v572_v46  ;;  %vm580_vm10 = vmor %vm578_vm9, %vm579_vm8 }
 0x113   :  { %v547_v52 = vsel %vm544_vm5, %v546_v39, %v542_v44  ;;  %v561_v51 = vsel %vm560_vm6, %v1771_v62, %v557_v50  ;;  %v575_v0 = vsub.f32 1.0, %v574_v63  ;;  %v3281_v39 = vld [vmem:[#allocation45_spill] sm:$0xff] }
 0x114   :  { %v566_v56 = vsel %vm563_vm7, %v565_v49, %v561_v51  ;;  %v589_v47 = vmul.f32 %v1775_v45, %v547_v52  ;;  %vm583_vm11 = vcmp.eq.f32.partialorder %v582_v54, 8.507059e+37 }
 0x115   :  { %v588_v42 = vmul.f32 0.0, %v566_v56  ;;  %v576_v43 = vmul.f32 %v1773_v13, %v575_v0 }
 0x117   :  { %v2559_v26 = vadd.f32 %v589_v47, %v588_v42  ;;  %v577_v53 = vadd.f32 %v1773_v13, %v576_v43 }
 0x119   :  { %1776 = vtanh.f32 %v2559_v26  ;;  %v581_v57 = vsel %vm580_vm10, %v1773_v13, %v577_v53 }
 0x11a   :  { %v586_v59 = vsel %vm583_vm11, %v585_v58, %v581_v57 }
 0x11f   :  { %v1777_v62 = vpop.eup %1776 }
 0x120   :  { %v2562_v55 = vmul.f32 %v1777_v62, %v586_v59 }
 0x122   :  { %615 = vmatmul.f32.vlgmr.msra.gmra.mxu0 %v2562_v55  ;;  %635 = vmatmul.f32.vlgmr.msra.gmra.mxu1 %v2562_v55 }
 0x123   :  { %655 = vmatmul.f32.vlgmr.msra.gmra.mxu2 %v2562_v55  ;;  %675 = vmatmul.f32.vlgmr.msra.gmra.mxu3 %v2562_v55 }
 0x124   :  { %905 = vmatpush.msra.mxu0 %v2167_v1  ;;  %925 = vmatpush.msra.mxu1 %v2169_v2  ;;  %v3252_v1 = vld [vmem:[#allocation18_spill] sm:$0xff]  ;;  %v3253_v2 = vld [vmem:[#allocation17_spill] sm:$0xff] }
 0x125   :  { %945 = vmatpush.msra.mxu2 %v2173_v4  ;;  %965 = vmatpush.msra.mxu3 %v2171_v3  ;;  %v3254_v3 = vld [vmem:[#allocation19_spill] sm:$0xff]  ;;  %v3255_v4 = vld [vmem:[#allocation20_spill] sm:$0xff] }
 0x126   :  { %906 = vmatpush.msra.mxu0 %v2175_v5  ;;  %926 = vmatpush.msra.mxu1 %v2177_v6  ;;  %v3256_v5 = vld [vmem:[#allocation22_spill] sm:$0xff]  ;;  %v3257_v6 = vld [vmem:[#allocation21_spill] sm:$0xff] }
 0x127   :  { %946 = vmatpush.msra.mxu2 %v2183_v8  ;;  %966 = vmatpush.msra.mxu3 %v2181_v7  ;;  %v3258_v7 = vld [vmem:[#allocation23_spill] sm:$0xff]  ;;  %v3259_v8 = vld [vmem:[#allocation24_spill] sm:$0xff] }
 0x128   :  { %907 = vmatpush.msra.mxu0 %v2186_v9  ;;  %927 = vmatpush.msra.mxu1 %v2188_v10  ;;  %v3260_v9 = vld [vmem:[#allocation26_spill] sm:$0xff]  ;;  %v3261_v10 = vld [vmem:[#allocation25_spill] sm:$0xff] }
 0x129   :  { %947 = vmatpush.msra.mxu2 %v2195_v12  ;;  %967 = vmatpush.msra.mxu3 %v2193_v11  ;;  %v3262_v11 = vld [vmem:[#allocation27_spill] sm:$0xff]  ;;  %v3263_v12 = vld [vmem:[#allocation28_spill] sm:$0xff] }
 0x12a   :  { %908 = vmatpush.msra.mxu0 %v2201_v14  ;;  %928 = vmatpush.msra.mxu1 %v2203_v15  ;;  %v3264_v14 = vld [vmem:[#allocation30_spill] sm:$0xff]  ;;  %v3265_v15 = vld [vmem:[#allocation29_spill] sm:$0xff] }
 0x12b   :  { %948 = vmatpush.msra.mxu2 %v2209_v17  ;;  %968 = vmatpush.msra.mxu3 %v2207_v16  ;;  %v3266_v16 = vld [vmem:[#allocation31_spill] sm:$0xff]  ;;  %v3267_v17 = vld [vmem:[#allocation32_spill] sm:$0xff] }
 0x12c   :  { %909 = vmatpush.msra.mxu0 %v2211_v18  ;;  %929 = vmatpush.msra.mxu1 %v2213_v19  ;;  %v3268_v18 = vld [vmem:[#allocation34_spill] sm:$0xff]  ;;  %v3269_v19 = vld [vmem:[#allocation33_spill] sm:$0xff] }
 0x12d   :  { %949 = vmatpush.msra.mxu2 %v2219_v21  ;;  %969 = vmatpush.msra.mxu3 %v2217_v20  ;;  %v3270_v20 = vld [vmem:[#allocation35_spill] sm:$0xff]  ;;  %v3271_v21 = vld [vmem:[#allocation36_spill] sm:$0xff] }
 0x12e   :  { %910 = vmatpush.msra.mxu0 %v2222_v22  ;;  %930 = vmatpush.msra.mxu1 %v2224_v23  ;;  %v3272_v22 = vld [vmem:[#allocation37_spill] sm:$0xff]  ;;  %v3273_v23 = vld [vmem:[#allocation38_spill] sm:$0xff] }
 0x12f   :  { %950 = vmatpush.msra.mxu2 %v2231_v25  ;;  %970 = vmatpush.msra.mxu3 %v2229_v24  ;;  %v3274_v24 = vld [vmem:[#allocation39_spill] sm:$0xff]  ;;  %v3275_v25 = vld [vmem:[#allocation40_spill] sm:$0xff] }
 0x130   :  { %911 = vmatpush.msra.mxu0 %v2237_v27  ;;  %931 = vmatpush.msra.mxu1 %v2239_v28  ;;  %v3276_v27 = vld [vmem:[#allocation41_spill] sm:$0xff]  ;;  %v3277_v28 = vld [vmem:[#allocation42_spill] sm:$0xff] }
 0x131   :  { %951 = vmatpush.msra.mxu2 %v2245_v30  ;;  %971 = vmatpush.msra.mxu3 %v2243_v29 }
 0x132   :  { %912 = vmatpush.msra.mxu0 %v2247_v31  ;;  %932 = vmatpush.msra.mxu1 %v2249_v32  ;;  %v3278_v31 = vld [vmem:[#allocation43_spill] sm:$0xff] }
 0x133   :  { %952 = vmatpush.msra.mxu2 %v2255_v34  ;;  %972 = vmatpush.msra.mxu3 %v2253_v33  ;;  %v3279_v33 = vld [vmem:[#allocation44_spill] sm:$0xff] }
 0x134   :  { %913 = vmatpush.msra.mxu0 %v2258_v35  ;;  %933 = vmatpush.msra.mxu1 %v2260_v36 }
 0x135   :  { %953 = vmatpush.msra.mxu2 %v2267_v38  ;;  %973 = vmatpush.msra.mxu3 %v2265_v37  ;;  %v3280_v38 = vld [vmem:[#allocation46_spill] sm:$0xff] }
 0x136   :  { %914 = vmatpush.msra.mxu0 %v2273_v40  ;;  %934 = vmatpush.msra.mxu1 %v2275_v41 }
 0x137   :  { %954 = vmatpush.msra.mxu2 %v3252_v1  ;;  %974 = vmatpush.msra.mxu3 %v3253_v2 }
 0x138   :  { %915 = vmatpush.msra.mxu0 %v3254_v3  ;;  %935 = vmatpush.msra.mxu1 %v3255_v4 }
 0x139   :  { %955 = vmatpush.msra.mxu2 %v3256_v5  ;;  %975 = vmatpush.msra.mxu3 %v3257_v6 }
 0x13a   :  { %916 = vmatpush.msra.mxu0 %v3258_v7  ;;  %936 = vmatpush.msra.mxu1 %v3259_v8 }
 0x13b   :  { %956 = vmatpush.msra.mxu2 %v3260_v9  ;;  %976 = vmatpush.msra.mxu3 %v3261_v10 }
 0x13c   :  { %917 = vmatpush.msra.mxu0 %v3262_v11  ;;  %937 = vmatpush.msra.mxu1 %v3263_v12 }
 0x13d   :  { %957 = vmatpush.msra.mxu2 %v3264_v14  ;;  %977 = vmatpush.msra.mxu3 %v3265_v15 }
 0x13e   :  { %918 = vmatpush.msra.mxu0 %v3266_v16  ;;  %938 = vmatpush.msra.mxu1 %v3267_v17 }
 0x13f   :  { %958 = vmatpush.msra.mxu2 %v3268_v18  ;;  %978 = vmatpush.msra.mxu3 %v3269_v19 }
 0x140   :  { %919 = vmatpush.msra.mxu0 %v3270_v20  ;;  %939 = vmatpush.msra.mxu1 %v3271_v21 }
 0x141   :  { %959 = vmatpush.msra.mxu2 %v3272_v22  ;;  %979 = vmatpush.msra.mxu3 %v3273_v23 }
 0x142   :  { %920 = vmatpush.msra.mxu0 %v3274_v24  ;;  %940 = vmatpush.msra.mxu1 %v3275_v25 }
 0x143   :  { %960 = vmatpush.msra.mxu2 %v3276_v27  ;;  %980 = vmatpush.msra.mxu3 %v3277_v28 }
 0x19f   :  { %v616_v29 = vpop.f32.mrf.mxu0  ;;  %v636_v30 = vpop.f32.mrf.mxu1 }
 0x1a0   :  { %v679_v32 = vadd.f32 %v616_v29, %v3278_v31  ;;  %v680_v34 = vadd.f32 %v636_v30, %v3279_v33  ;;  %v2649_v30 = vld [vmem:[#allocation8 + $0x1e8] sm:$0xff]  ;;  %v2652_v31 = vld [vmem:[#allocation8 + $0x1f0] sm:$0xff]  ;;  %v2658_v33 = vld [vmem:[#allocation8 + $0x1c0] sm:$0xff] }
 0x1a2   :  { %v1729_v35 = vmul.f32 -1.442695, %v679_v32  ;;  %v1730_v36 = vmul.f32 -1.442695, %v680_v34  ;;  %v2655_v32 = vld [vmem:[#allocation8 + $0x1f8] sm:$0xff]  ;;  %v2661_v34 = vld [vmem:[#allocation8 + $0x1c8] sm:$0xff] }
 0x1a4   :  { %1778 = vpow2.f32 %v1729_v35  ;;  %v2664_v35 = vld [vmem:[#allocation8 + $0x1d0] sm:$0xff] }
 0x1a5   :  { %1780 = vpow2.f32 %v1730_v36  ;;  %v2667_v36 = vld [vmem:[#allocation8 + $0x1d8] sm:$0xff] }
 0x1a6   :  { %v676_v37 = vpop.f32.mrf.mxu3  ;;  %v656_v46 = vpop.f32.mrf.mxu2 }
 0x1a7   :  { %v682_v40 = vadd.f32 %v676_v37, %v3280_v38  ;;  %v681_v50 = vadd.f32 %v656_v46, %v3281_v39  ;;  %v2670_v37 = vld [vmem:[#allocation8 + $0x1a0] sm:$0xff]  ;;  %v2673_v38 = vld [vmem:[#allocation8 + $0x1a8] sm:$0xff] }
 0x1a8   :  { %v2694_v46 = vld [vmem:[#allocation8 + $0x160] sm:$0xff] }
 0x1a9   :  { %v1731_v41 = vmul.f32 -1.442695, %v682_v40  ;;  %v2676_v40 = vld [vmem:[#allocation8 + $0x1b0] sm:$0xff]  ;;  %v2706_v39 = vld [vmem:[#allocation8 + $0x140] sm:$0xff] }
 0x1aa   :  { %v1779_v42 = vpop.eup %1778 }
 0x1ab   :  { %v1781_v43 = vpop.eup %1780  ;;  %v686_v47 = vadd.f32 1.0, %v1779_v42  ;;  %1782 = vpow2.f32 %v1731_v41  ;;  %v2679_v41 = vld [vmem:[#allocation8 + $0x1b8] sm:$0xff]  ;;  %v2682_v42 = vld [vmem:[#allocation8 + $0x180] sm:$0xff] }
 0x1ac   :  { %v705_v0 = vadd.f32 1.0, %v1781_v43  ;;  %v2685_v43 = vld [vmem:[#allocation8 + $0x188] sm:$0xff] }
 0x1ad   :  { %1784 = vrcp.f32 %v686_v47  ;;  %v698_v51 = vand.u32 2147483648, %v686_v47  ;;  %v696_v48 = vand.u32 2147483647, %v686_v47  ;;  %vm692_vm14 = vweird.f32 %v686_v47 }
 0x1ae   :  { %1786 = vrcp.f32 %v705_v0  ;;  %v717_v56 = vand.u32 2147483648, %v705_v0  ;;  %v715_v57 = vand.u32 2147483647, %v705_v0  ;;  %vm711_vm15 = vweird.f32 %v705_v0 }
 0x1af   :  { %v699_v59 = vor.u32 1.1754944e-38, %v698_v51  ;;  %vm697_vm2 = vcmp.eq.f32.partialorder %v696_v48, 8.507059e+37  ;;  %v2727_v51 = vld [vmem:[#allocation8 + $0x138] sm:$0xff]  ;;  %v2736_v48 = vld [vmem:[#allocation8 + $0x110] sm:$0xff] }
 0x1b0   :  { %v718_v3 = vor.u32 1.1754944e-38, %v717_v56  ;;  %vm716_vm3 = vcmp.eq.f32.partialorder %v715_v57, 8.507059e+37  ;;  %v2730_v56 = vld [vmem:[#allocation8 + $0x100] sm:$0xff] }
 0x1b1   :  { %v1783_v60 = vpop.eup %1782  ;;  %v2742_v57 = vld [vmem:[#allocation8 + $0xe0] sm:$0xff] }
 0x1b2   :  { %v725_v13 = vadd.f32 1.0, %v1783_v60  ;;  %v2697_v60 = vld [vmem:[#allocation8 + $0x168] sm:$0xff] }
 0x1b3   :  { %v1785_v61 = vpop.eup %1784 }
 0x1b4   :  { %v1787_v63 = vpop.eup %1786  ;;  %v688_v49 = vmul.f32 %v1785_v61, %v686_v47  ;;  %1788 = vrcp.f32 %v725_v13  ;;  %vm693_vm12 = vweird.f32 %v1785_v61  ;;  %v737_v16 = vand.u32 2147483648, %v725_v13  ;;  %v2688_v47 = vld [vmem:[#allocation8 + $0x190] sm:$0xff] }
 0x1b5   :  { %v707_v44 = vmul.f32 %v1787_v63, %v705_v0  ;;  %1790 = vtanh.f32 %v681_v50  ;;  %vm712_vm13 = vweird.f32 %v1787_v63  ;;  %vm694_vm0 = vmor %vm692_vm14, %vm693_vm12  ;;  %vm731_vm5 = vweird.f32 %v725_v13  ;;  %v2691_v0 = vld [vmem:[#allocation8 + $0x198] sm:$0xff]  ;;  %v2709_v50 = vld [vmem:[#allocation8 + $0x148] sm:$0xff] }
 0x1b6   :  { %v689_v45 = vsub.f32 1.0, %v688_v49  ;;  %vm713_vm1 = vmor %vm711_vm15, %vm712_vm13  ;;  %v735_v17 = vand.u32 2147483647, %v725_v13  ;;  %v738_v19 = vor.u32 1.1754944e-38, %v737_v16  ;;  %v2715_v49 = vld [vmem:[#allocation8 + $0x158] sm:$0xff]  ;;  %v2793_v16 = vld [vmem:[#allocation8 + $0x68] sm:$0xff] }
 0x1b7   :  { %v708_v52 = vsub.f32 1.0, %v707_v44  ;;  %v2718_v44 = vld [vmem:[#allocation8 + $0x120] sm:$0xff]  ;;  %3295 = vst [vmem:[#allocation29_spill] sm:$0xff] %v2793_v16 }
 0x1b8   :  { %v690_v53 = vmul.f32 %v1785_v61, %v689_v45  ;;  %vm736_vm7 = vcmp.eq.f32.partialorder %v735_v17, 8.507059e+37  ;;  %v2721_v45 = vld [vmem:[#allocation8 + $0x128] sm:$0xff]  ;;  %v2796_v17 = vld [vmem:[#allocation8 + $0x70] sm:$0xff] }
 0x1b9   :  { %v709_v54 = vmul.f32 %v1787_v63, %v708_v52  ;;  %v2724_v52 = vld [vmem:[#allocation8 + $0x130] sm:$0xff]  ;;  %3296 = vst [vmem:[#allocation31_spill] sm:$0xff] %v2796_v17 }
 0x1ba   :  { %v1789_v58 = vpop.eup %1788  ;;  %v691_v62 = vadd.f32 %v1785_v61, %v690_v53  ;;  %v2733_v53 = vld [vmem:[#allocation8 + $0x108] sm:$0xff] }
 0x1bb   :  { %v710_v1 = vadd.f32 %v1787_v63, %v709_v54  ;;  %v727_v2 = vmul.f32 %v1789_v58, %v725_v13  ;;  %v1791_v5 = vpop.eup %1790  ;;  %vm732_vm4 = vweird.f32 %v1789_v58  ;;  %v2700_v13 = vld [vmem:[#allocation8 + $0x170] sm:$0xff]  ;;  %v2739_v54 = vld [vmem:[#allocation8 + $0x118] sm:$0xff] }
 0x1bc   :  { %v695_v4 = vsel %vm694_vm0, %v1785_v61, %v691_v62  ;;  %vm733_vm6 = vmor %vm731_vm5, %vm732_vm4  ;;  %v2703_v61 = vld [vmem:[#allocation8 + $0x178] sm:$0xff]  ;;  %v2748_v62 = vld [vmem:[#allocation8 + $0xf0] sm:$0xff] }
 0x1bd   :  { %v700_v6 = vsel %vm697_vm2, %v699_v59, %v695_v4  ;;  %v714_v7 = vsel %vm713_vm1, %v1787_v63, %v710_v1  ;;  %v728_v8 = vsub.f32 1.0, %v727_v2  ;;  %v2712_v63 = vld [vmem:[#allocation8 + $0x150] sm:$0xff]  ;;  %v2751_v59 = vld [vmem:[#allocation8 + $0xf8] sm:$0xff]  ;;  %v2754_v1 = vld [vmem:[#allocation8 + $0xc0] sm:$0xff] }
 0x1be   :  { %v719_v9 = vsel %vm716_vm3, %v718_v3, %v714_v7  ;;  %v742_v10 = vmul.f32 %v1791_v5, %v700_v6  ;;  %3282 = vst [vmem:[#allocation18_spill] sm:$0xff] %v2754_v1  ;;  %v2757_v2 = vld [vmem:[#allocation8 + $0xc8] sm:$0xff]  ;;  %v2760_v3 = vld [vmem:[#allocation8 + $0xd0] sm:$0xff]  ;;  %v2763_v4 = vld [vmem:[#allocation8 + $0xd8] sm:$0xff] }
 0x1bf   :  { %v741_v11 = vmul.f32 %v719_v9, %v2559_v26  ;;  %v729_v12 = vmul.f32 %v1789_v58, %v728_v8  ;;  %v2646_v26 = vld [vmem:[#allocation8 + $0x1e0] sm:$0xff]  ;;  %3283 = vst [vmem:[#allocation17_spill] sm:$0xff] %v2757_v2  ;;  %v2769_v6 = vld [vmem:[#allocation8 + $0xa8] sm:$0xff]  ;;  %v2772_v7 = vld [vmem:[#allocation8 + $0xb0] sm:$0xff] }
 0x1c0   :  { %3284 = vst [vmem:[#allocation19_spill] sm:$0xff] %v2760_v3  ;;  %v2766_v5 = vld [vmem:[#allocation8 + $0xa0] sm:$0xff]  ;;  %v2775_v8 = vld [vmem:[#allocation8 + $0xb8] sm:$0xff] }
 0x1c1   :  { %v2637_v14 = vadd.f32 %v742_v10, %v741_v11  ;;  %v730_v15 = vadd.f32 %v1789_v58, %v729_v12  ;;  %3285 = vst [vmem:[#allocation20_spill] sm:$0xff] %v2763_v4  ;;  %v2778_v9 = vld [vmem:[#allocation8 + $0x80] sm:$0xff]  ;;  %v2781_v10 = vld [vmem:[#allocation8 + $0x88] sm:$0xff]  ;;  %v2784_v11 = vld [vmem:[#allocation8 + $0x90] sm:$0xff] }
 0x1c2   :  { %3286 = vst [vmem:[#allocation22_spill] sm:$0xff] %v2766_v5  ;;  %v2787_v12 = vld [vmem:[#allocation8 + $0x98] sm:$0xff] }
 0x1c3   :  { %1792 = vtanh.f32 %v2637_v14  ;;  %v734_v18 = vsel %vm733_vm6, %v1789_v58, %v730_v15  ;;  %v2745_v58 = vld [vmem:[#allocation8 + $0xe8] sm:$0xff]  ;;  %3287 = vst [vmem:[#allocation21_spill] sm:$0xff] %v2769_v6  ;;  %v2790_v15 = vld [vmem:[#allocation8 + $0x60] sm:$0xff] }
 0x1c4   :  { %v739_v21 = vsel %vm736_vm7, %v738_v19, %v734_v18  ;;  %3288 = vst [vmem:[#allocation23_spill] sm:$0xff] %v2772_v7  ;;  %v2799_v18 = vld [vmem:[#allocation8 + $0x78] sm:$0xff]  ;;  %v2802_v19 = vld [vmem:[#allocation8 + $0x40] sm:$0xff] }
 0x1c5   :  { %3289 = vst [vmem:[#allocation24_spill] sm:$0xff] %v2775_v8 }
 0x1c6   :  { %3290 = vst [vmem:[#allocation26_spill] sm:$0xff] %v2778_v9 }
 0x1c7   :  { %3291 = vst [vmem:[#allocation25_spill] sm:$0xff] %v2781_v10 }
 0x1c8   :  { %3292 = vst [vmem:[#allocation27_spill] sm:$0xff] %v2784_v11 }
 0x1c9   :  { %v1793_v20 = vpop.eup %1792  ;;  %3293 = vst [vmem:[#allocation28_spill] sm:$0xff] %v2787_v12 }
 0x1ca   :  { %v2640_v29 = vmul.f32 %v1793_v20, %v739_v21  ;;  %3294 = vst [vmem:[#allocation30_spill] sm:$0xff] %v2790_v15  ;;  %v2805_v20 = vld [vmem:[#allocation8 + $0x48] sm:$0xff]  ;;  %v2808_v21 = vld [vmem:[#allocation8 + $0x50] sm:$0xff] }
 0x1cb   :  { %3297 = vst [vmem:[#allocation32_spill] sm:$0xff] %v2799_v18 }
 0x1cc   :  { %768 = vmatmul.f32.vlgmr.msrb.gmra.mxu0 %v2640_v29  ;;  %788 = vmatmul.f32.vlgmr.msrb.gmra.mxu1 %v2640_v29  ;;  %3298 = vst [vmem:[#allocation34_spill] sm:$0xff] %v2802_v19 }
 0x1cd   :  { %808 = vmatmul.f32.vlgmr.msrb.gmra.mxu2 %v2640_v29  ;;  %828 = vmatmul.f32.vlgmr.msrb.gmra.mxu3 %v2640_v29  ;;  %3299 = vst [vmem:[#allocation33_spill] sm:$0xff] %v2805_v20 }
 0x1ce   :  { %1058 = vmatpush.msrb.mxu0 %v2646_v26  ;;  %1078 = vmatpush.msrb.mxu1 %v2649_v30  ;;  %3300 = vst [vmem:[#allocation35_spill] sm:$0xff] %v2808_v21 }
 0x1cf   :  { %1098 = vmatpush.msrb.mxu2 %v2652_v31  ;;  %1118 = vmatpush.msrb.mxu3 %v2655_v32 }
 0x1d0   :  { %1059 = vmatpush.msrb.mxu0 %v2658_v33  ;;  %1079 = vmatpush.msrb.mxu1 %v2661_v34 }
 0x1d1   :  { %1099 = vmatpush.msrb.mxu2 %v2664_v35  ;;  %1119 = vmatpush.msrb.mxu3 %v2667_v36 }
 0x1d2   :  { %1060 = vmatpush.msrb.mxu0 %v2670_v37  ;;  %1080 = vmatpush.msrb.mxu1 %v2673_v38 }
 0x1d3   :  { %1100 = vmatpush.msrb.mxu2 %v2676_v40  ;;  %1120 = vmatpush.msrb.mxu3 %v2679_v41 }
 0x1d4   :  { %1061 = vmatpush.msrb.mxu0 %v2682_v42  ;;  %1081 = vmatpush.msrb.mxu1 %v2685_v43 }
 0x1d5   :  { %1101 = vmatpush.msrb.mxu2 %v2688_v47  ;;  %1121 = vmatpush.msrb.mxu3 %v2691_v0 }
 0x1d6   :  { %1062 = vmatpush.msrb.mxu0 %v2694_v46  ;;  %1082 = vmatpush.msrb.mxu1 %v2697_v60 }
 0x1d7   :  { %1102 = vmatpush.msrb.mxu2 %v2700_v13  ;;  %1122 = vmatpush.msrb.mxu3 %v2703_v61 }
 0x1d8   :  { %1063 = vmatpush.msrb.mxu0 %v2706_v39  ;;  %1083 = vmatpush.msrb.mxu1 %v2709_v50 }
 0x1d9   :  { %1103 = vmatpush.msrb.mxu2 %v2712_v63  ;;  %1123 = vmatpush.msrb.mxu3 %v2715_v49 }
 0x1da   :  { %1064 = vmatpush.msrb.mxu0 %v2718_v44  ;;  %1084 = vmatpush.msrb.mxu1 %v2721_v45 }
 0x1db   :  { %1104 = vmatpush.msrb.mxu2 %v2724_v52  ;;  %1124 = vmatpush.msrb.mxu3 %v2727_v51 }
 0x1dc   :  { %1065 = vmatpush.msrb.mxu0 %v2730_v56  ;;  %1085 = vmatpush.msrb.mxu1 %v2733_v53 }
 0x1dd   :  { %1105 = vmatpush.msrb.mxu2 %v2736_v48  ;;  %1125 = vmatpush.msrb.mxu3 %v2739_v54 }
 0x1de   :  { %1066 = vmatpush.msrb.mxu0 %v2742_v57  ;;  %1086 = vmatpush.msrb.mxu1 %v2745_v58 }
 0x1df   :  { %1106 = vmatpush.msrb.mxu2 %v2748_v62  ;;  %1126 = vmatpush.msrb.mxu3 %v2751_v59 }
 0x1e0   :  { %1067 = vmatpush.msrb.mxu0 %v2754_v1  ;;  %1087 = vmatpush.msrb.mxu1 %v2757_v2 }
 0x1e1   :  { %1107 = vmatpush.msrb.mxu2 %v2760_v3  ;;  %1127 = vmatpush.msrb.mxu3 %v2763_v4 }
 0x1e2   :  { %1068 = vmatpush.msrb.mxu0 %v2766_v5  ;;  %1088 = vmatpush.msrb.mxu1 %v2769_v6 }
 0x1e3   :  { %1108 = vmatpush.msrb.mxu2 %v2772_v7  ;;  %1128 = vmatpush.msrb.mxu3 %v2775_v8 }
 0x1e4   :  { %1069 = vmatpush.msrb.mxu0 %v2778_v9  ;;  %1089 = vmatpush.msrb.mxu1 %v2781_v10 }
 0x1e5   :  { %1109 = vmatpush.msrb.mxu2 %v2784_v11  ;;  %1129 = vmatpush.msrb.mxu3 %v2787_v12 }
 0x1e6   :  { %1070 = vmatpush.msrb.mxu0 %v2790_v15  ;;  %1090 = vmatpush.msrb.mxu1 %v2793_v16  ;;  %v2811_v16 = vld [vmem:[#allocation8 + $0x58] sm:$0xff] }
 0x1e7   :  { %1110 = vmatpush.msrb.mxu2 %v2796_v17  ;;  %1130 = vmatpush.msrb.mxu3 %v2799_v18  ;;  %3301 = vst [vmem:[#allocation36_spill] sm:$0xff] %v2811_v16  ;;  %v2814_v17 = vld [vmem:[#allocation8 + $0x20] sm:$0xff]  ;;  %v2817_v18 = vld [vmem:[#allocation8 + $0x28] sm:$0xff] }
 0x1e8   :  { %1071 = vmatpush.msrb.mxu0 %v2802_v19  ;;  %1091 = vmatpush.msrb.mxu1 %v2805_v20  ;;  %3302 = vst [vmem:[#allocation37_spill] sm:$0xff] %v2814_v17  ;;  %v3304_v20 = vld [vmem:[#allocation47_spill] sm:$0xff]  ;;  %v3305_v19 = vld [vmem:[#allocation48_spill] sm:$0xff] }
 0x1e9   :  { %1111 = vmatpush.msrb.mxu2 %v2808_v21  ;;  %1131 = vmatpush.msrb.mxu3 %v2811_v16  ;;  %3303 = vst [vmem:[#allocation38_spill] sm:$0xff] %v2817_v18 }
 0x1ea   :  { %1072 = vmatpush.msrb.mxu0 %v2814_v17  ;;  %1092 = vmatpush.msrb.mxu1 %v2817_v18 }
 0x1eb   :  { %1112 = vmatpush.msrb.mxu2 %v3272_v22  ;;  %1132 = vmatpush.msrb.mxu3 %v3273_v23  ;;  %v3306_v23 = vld [vmem:[#allocation50_spill] sm:$0xff] }
 0x1ec   :  { %1073 = vmatpush.msrb.mxu0 %v3274_v24  ;;  %1093 = vmatpush.msrb.mxu1 %v3275_v25 }
 0x1ed   :  { %1113 = vmatpush.msrb.mxu2 %v3276_v27  ;;  %1133 = vmatpush.msrb.mxu3 %v3277_v28 }
 0x249   :  { %v769_v16 = vpop.f32.mrf.mxu0  ;;  %v789_v21 = vpop.f32.mrf.mxu1 }
 0x24a   :  { %v832_v17 = vadd.f32 %v769_v16, %v3304_v20  ;;  %v833_v15 = vadd.f32 %v789_v21, %v3305_v19  ;;  %v3307_v19 = vld [vmem:[#allocation49_spill] sm:$0xff] }
 0x24c   :  { %v1732_v12 = vmul.f32 -1.442695, %v832_v17  ;;  %v1733_v18 = vmul.f32 -1.442695, %v833_v15 }
 0x24e   :  { %1794 = vpow2.f32 %v1732_v12 }
 0x24f   :  { %1796 = vpow2.f32 %v1733_v18 }
 0x250   :  { %v829_v22 = vpop.f32.mrf.mxu3  ;;  %v809_v28 = vpop.f32.mrf.mxu2 }
 0x251   :  { %v835_v11 = vadd.f32 %v829_v22, %v3306_v23  ;;  %v834_v17 = vadd.f32 %v809_v28, %v3307_v19 }
 0x253   :  { %v1734_v24 = vmul.f32 -1.442695, %v835_v11 }
 0x254   :  { %v1795_v10 = vpop.eup %1794 }
 0x255   :  { %v1797_v25 = vpop.eup %1796  ;;  %v839_v9 = vadd.f32 1.0, %v1795_v10  ;;  %1798 = vpow2.f32 %v1734_v24 }
 0x256   :  { %v858_v27 = vadd.f32 1.0, %v1797_v25 }
 0x257   :  { %1800 = vrcp.f32 %v839_v9  ;;  %v851_v11 = vand.u32 2147483648, %v839_v9  ;;  %v849_v24 = vand.u32 2147483647, %v839_v9  ;;  %vm845_vm10 = vweird.f32 %v839_v9 }
 0x258   :  { %1802 = vrcp.f32 %v858_v27  ;;  %v870_v23 = vand.u32 2147483648, %v858_v27  ;;  %v868_v7 = vand.u32 2147483647, %v858_v27  ;;  %vm864_vm11 = vweird.f32 %v858_v27 }
 0x259   :  { %v852_v28 = vor.u32 1.1754944e-38, %v851_v11  ;;  %vm850_vm14 = vcmp.eq.f32.partialorder %v849_v24, 8.507059e+37 }
 0x25a   :  { %vm869_vm15 = vcmp.eq.f32.partialorder %v868_v7, 8.507059e+37 }
 0x25b   :  { %v1799_v8 = vpop.eup %1798 }
 0x25c   :  { %v878_v16 = vadd.f32 1.0, %v1799_v8 }
 0x25d   :  { %v1801_v20 = vpop.eup %1800 }
 0x25e   :  { %v1803_v15 = vpop.eup %1802  ;;  %v841_v12 = vmul.f32 %v1801_v20, %v839_v9  ;;  %1804 = vrcp.f32 %v878_v16  ;;  %vm846_vm8 = vweird.f32 %v1801_v20  ;;  %v890_v11 = vand.u32 2147483648, %v878_v16 }
 0x25f   :  { %v860_v18 = vmul.f32 %v1803_v15, %v858_v27  ;;  %1806 = vtanh.f32 %v834_v17  ;;  %vm865_vm9 = vweird.f32 %v1803_v15  ;;  %vm847_vm12 = vmor %vm845_vm10, %vm846_vm8  ;;  %vm884_vm1 = vweird.f32 %v878_v16 }
 0x260   :  { %v842_v21 = vsub.f32 1.0, %v841_v12  ;;  %vm866_vm13 = vmor %vm864_vm11, %vm865_vm9  ;;  %v871_v12 = vor.u32 1.1754944e-38, %v870_v23  ;;  %v891_v24 = vor.u32 1.1754944e-38, %v890_v11  ;;  %v3326_v11 = vld [vmem:[#allocation35_spill] sm:$0xff] }
 0x261   :  { %v861_v22 = vsub.f32 1.0, %v860_v18 }
 0x262   :  { %v843_v10 = vmul.f32 %v1801_v20, %v842_v21 }
 0x263   :  { %v862_v25 = vmul.f32 %v1803_v15, %v861_v22 }
 0x264   :  { %v1805_v6 = vpop.eup %1804  ;;  %v844_v8 = vadd.f32 %v1801_v20, %v843_v10 }
 0x265   :  { %v863_v19 = vadd.f32 %v1803_v15, %v862_v25  ;;  %v880_v5 = vmul.f32 %v1805_v6, %v878_v16  ;;  %v1807_v17 = vpop.eup %1806  ;;  %vm885_vm0 = vweird.f32 %v1805_v6  ;;  %v3315_v25 = vld [vmem:[#allocation24_spill] sm:$0xff] }
 0x266   :  { %v848_v18 = vsel %vm847_vm12, %v1801_v20, %v844_v8  ;;  %v888_v20 = vand.u32 2147483647, %v878_v16  ;;  %vm886_vm2 = vmor %vm884_vm1, %vm885_vm0  ;;  %v3314_v16 = vld [vmem:[#allocation23_spill] sm:$0xff]  ;;  %v3316_v8 = vld [vmem:[#allocation26_spill] sm:$0xff] }
 0x267   :  { %v853_v4 = vsel %vm850_vm14, %v852_v28, %v848_v18  ;;  %v867_v21 = vsel %vm866_vm13, %v1803_v15, %v863_v19  ;;  %v881_v3 = vsub.f32 1.0, %v880_v5  ;;  %v3317_v28 = vld [vmem:[#allocation25_spill] sm:$0xff]  ;;  %v3318_v19 = vld [vmem:[#allocation27_spill] sm:$0xff]  ;;  %v3320_v18 = vld [vmem:[#allocation30_spill] sm:$0xff] }
 0x268   :  { %v872_v22 = vsel %vm869_vm15, %v871_v12, %v867_v21  ;;  %v895_v2 = vmul.f32 %v1807_v17, %v853_v4  ;;  %vm889_vm3 = vcmp.eq.f32.partialorder %v888_v20, 8.507059e+37  ;;  %v3312_v4 = vld [vmem:[#allocation22_spill] sm:$0xff]  ;;  %v3319_v12 = vld [vmem:[#allocation28_spill] sm:$0xff]  ;;  %v3321_v17 = vld [vmem:[#allocation29_spill] sm:$0xff] }
 0x269   :  { %v894_v1 = vmul.f32 %v872_v22, %v2637_v14  ;;  %v882_v10 = vmul.f32 %v1805_v6, %v881_v3  ;;  %v746_v14 = vadd.f32 %v2640_v29, %v2562_v55  ;;  %v3308_v55 = vld [vmem:[#allocation18_spill] sm:$0xff]  ;;  %v3309_v29 = vld [vmem:[#allocation17_spill] sm:$0xff]  ;;  %v3311_v3 = vld [vmem:[#allocation20_spill] sm:$0xff] }
 0x26a   :  { %v3322_v21 = vld [vmem:[#allocation31_spill] sm:$0xff]  ;;  %v3323_v22 = vld [vmem:[#allocation32_spill] sm:$0xff] }
 0x26b   :  { %v2831_v9 = vadd.f32 %v895_v2, %v894_v1  ;;  %v883_v27 = vadd.f32 %v1805_v6, %v882_v10  ;;  %v3310_v2 = vld [vmem:[#allocation19_spill] sm:$0xff]  ;;  %v3324_v10 = vld [vmem:[#allocation34_spill] sm:$0xff]  ;;  %v3327_v20 = vld [vmem:[#allocation36_spill] sm:$0xff] }
 0x26d   :  { %1808 = vtanh.f32 %v2831_v9  ;;  %v887_v23 = vsel %vm886_vm2, %v1805_v6, %v883_v27  ;;  %v3313_v6 = vld [vmem:[#allocation21_spill] sm:$0xff] }
 0x26e   :  { %v892_v5 = vsel %vm889_vm3, %v891_v24, %v887_v23  ;;  %v3325_v27 = vld [vmem:[#allocation33_spill] sm:$0xff]  ;;  %v3329_v24 = vld [vmem:[#allocation38_spill] sm:$0xff] }
 0x26f   :  { %v3328_v23 = vld [vmem:[#allocation37_spill] sm:$0xff] }
 0x273   :  { %v1809_v7 = vpop.eup %1808 }
 0x274   :  { %v898_v15 = vmul.f32 %v1809_v7, %v892_v5  ;;  %v2896_v7 = vld [vmem:[#allocation8 + $0x30] sm:$0xff]  ;;  %v2899_v5 = vld [vmem:[#allocation8 + $0x38] sm:$0xff] }
 0x275   :  { %3330 = vst [vmem:[#allocation39_spill] sm:$0xff] %v2896_v7 }
 0x276   :  { %921 = vmatmul.f32.vlgmr.msra.gmra.mxu0 %v898_v15  ;;  %941 = vmatmul.f32.vlgmr.msra.gmra.mxu1 %v898_v15  ;;  %v2836_v1 = vadd.f32 %v898_v15, %v746_v14  ;;  %3331 = vst [vmem:[#allocation40_spill] sm:$0xff] %v2899_v5  ;;  %v2905_v14 = vld [vmem:[#allocation8 + $0x8] sm:$0xff] }
 0x277   :  { %961 = vmatmul.f32.vlgmr.msra.gmra.mxu2 %v898_v15  ;;  %981 = vmatmul.f32.vlgmr.msra.gmra.mxu3 %v898_v15  ;;  %v2902_v15 = vld [vmem:[#allocation8] sm:$0xff]  ;;  %3333 = vst [vmem:[#allocation42_spill] sm:$0xff] %v2905_v14 }
 0x278   :  { %1211 = vmatpush.msra.mxu0 %v2646_v26  ;;  %1231 = vmatpush.msra.mxu1 %v2649_v30  ;;  %3332 = vst [vmem:[#allocation41_spill] sm:$0xff] %v2902_v15 }
 0x279   :  { %1251 = vmatpush.msra.mxu2 %v2652_v31  ;;  %1271 = vmatpush.msra.mxu3 %v2655_v32 }
 0x27a   :  { %1212 = vmatpush.msra.mxu0 %v2658_v33  ;;  %1232 = vmatpush.msra.mxu1 %v2661_v34 }
 0x27b   :  { %1252 = vmatpush.msra.mxu2 %v2664_v35  ;;  %1272 = vmatpush.msra.mxu3 %v2667_v36 }
 0x27c   :  { %1213 = vmatpush.msra.mxu0 %v2670_v37  ;;  %1233 = vmatpush.msra.mxu1 %v2673_v38 }
 0x27d   :  { %1253 = vmatpush.msra.mxu2 %v2676_v40  ;;  %1273 = vmatpush.msra.mxu3 %v2679_v41 }
 0x27e   :  { %1214 = vmatpush.msra.mxu0 %v2682_v42  ;;  %1234 = vmatpush.msra.mxu1 %v2685_v43 }
 0x27f   :  { %1254 = vmatpush.msra.mxu2 %v2688_v47  ;;  %1274 = vmatpush.msra.mxu3 %v2691_v0 }
 0x280   :  { %1215 = vmatpush.msra.mxu0 %v2694_v46  ;;  %1235 = vmatpush.msra.mxu1 %v2697_v60 }
 0x281   :  { %1255 = vmatpush.msra.mxu2 %v2700_v13  ;;  %1275 = vmatpush.msra.mxu3 %v2703_v61 }
 0x282   :  { %1216 = vmatpush.msra.mxu0 %v2706_v39  ;;  %1236 = vmatpush.msra.mxu1 %v2709_v50 }
 0x283   :  { %1256 = vmatpush.msra.mxu2 %v2712_v63  ;;  %1276 = vmatpush.msra.mxu3 %v2715_v49 }
 0x284   :  { %1217 = vmatpush.msra.mxu0 %v2718_v44  ;;  %1237 = vmatpush.msra.mxu1 %v2721_v45 }
 0x285   :  { %1257 = vmatpush.msra.mxu2 %v2724_v52  ;;  %1277 = vmatpush.msra.mxu3 %v2727_v51 }
 0x286   :  { %1218 = vmatpush.msra.mxu0 %v2730_v56  ;;  %1238 = vmatpush.msra.mxu1 %v2733_v53 }
 0x287   :  { %1258 = vmatpush.msra.mxu2 %v2736_v48  ;;  %1278 = vmatpush.msra.mxu3 %v2739_v54 }
 0x288   :  { %1219 = vmatpush.msra.mxu0 %v2742_v57  ;;  %1239 = vmatpush.msra.mxu1 %v2745_v58 }
 0x289   :  { %1259 = vmatpush.msra.mxu2 %v2748_v62  ;;  %1279 = vmatpush.msra.mxu3 %v2751_v59 }
 0x28a   :  { %1220 = vmatpush.msra.mxu0 %v3308_v55  ;;  %1240 = vmatpush.msra.mxu1 %v3309_v29 }
 0x28b   :  { %1260 = vmatpush.msra.mxu2 %v3310_v2  ;;  %1280 = vmatpush.msra.mxu3 %v3311_v3 }
 0x28c   :  { %1221 = vmatpush.msra.mxu0 %v3312_v4  ;;  %1241 = vmatpush.msra.mxu1 %v3313_v6 }
 0x28d   :  { %1261 = vmatpush.msra.mxu2 %v3314_v16  ;;  %1281 = vmatpush.msra.mxu3 %v3315_v25 }
 0x28e   :  { %1222 = vmatpush.msra.mxu0 %v3316_v8  ;;  %1242 = vmatpush.msra.mxu1 %v3317_v28 }
 0x28f   :  { %1262 = vmatpush.msra.mxu2 %v3318_v19  ;;  %1282 = vmatpush.msra.mxu3 %v3319_v12 }
 0x290   :  { %1223 = vmatpush.msra.mxu0 %v3320_v18  ;;  %1243 = vmatpush.msra.mxu1 %v3321_v17 }
 0x291   :  { %1263 = vmatpush.msra.mxu2 %v3322_v21  ;;  %1283 = vmatpush.msra.mxu3 %v3323_v22 }
 0x292   :  { %1224 = vmatpush.msra.mxu0 %v3324_v10  ;;  %1244 = vmatpush.msra.mxu1 %v3325_v27  ;;  %v3337_v27 = vld [vmem:[#allocation52_spill] sm:$0xff] }
 0x293   :  { %1264 = vmatpush.msra.mxu2 %v3326_v11  ;;  %1284 = vmatpush.msra.mxu3 %v3327_v20  ;;  %v2908_v20 = vld [vmem:[#allocation8 + $0x10] sm:$0xff]  ;;  %v3336_v11 = vld [vmem:[#allocation51_spill] sm:$0xff] }
 0x294   :  { %1225 = vmatpush.msra.mxu0 %v3328_v23  ;;  %1245 = vmatpush.msra.mxu1 %v3329_v24  ;;  %3334 = vst [vmem:[#allocation43_spill] sm:$0xff] %v2908_v20  ;;  %v2911_v24 = vld [vmem:[#allocation8 + $0x18] sm:$0xff] }
 0x295   :  { %1265 = vmatpush.msra.mxu2 %v2896_v7  ;;  %1285 = vmatpush.msra.mxu3 %v2899_v5  ;;  %3335 = vst [vmem:[#allocation44_spill] sm:$0xff] %v2911_v24 }
 0x296   :  { %1226 = vmatpush.msra.mxu0 %v2902_v15  ;;  %1246 = vmatpush.msra.mxu1 %v2905_v14  ;;  %v3338_v14 = vld [vmem:[#allocation54_spill] sm:$0xff] }
 0x297   :  { %1266 = vmatpush.msra.mxu2 %v2908_v20  ;;  %1286 = vmatpush.msra.mxu3 %v2911_v24 }
 0x2f3   :  { %v922_v7 = vpop.f32.mrf.mxu0  ;;  %v942_v23 = vpop.f32.mrf.mxu1 }
 0x2f4   :  { %v985_v5 = vadd.f32 %v922_v7, %v3336_v11  ;;  %v986_v10 = vadd.f32 %v942_v23, %v3337_v27  ;;  %v3339_v27 = vld [vmem:[#allocation53_spill] sm:$0xff] }
 0x2f6   :  { %v1735_v22 = vmul.f32 -1.442695, %v985_v5  ;;  %v1736_v15 = vmul.f32 -1.442695, %v986_v10 }
 0x2f8   :  { %1810 = vpow2.f32 %v1735_v22 }
 0x2f9   :  { %1812 = vpow2.f32 %v1736_v15 }
 0x2fa   :  { %v982_v21 = vpop.f32.mrf.mxu3  ;;  %v962_v24 = vpop.f32.mrf.mxu2 }
 0x2fb   :  { %v988_v17 = vadd.f32 %v982_v21, %v3338_v14  ;;  %v987_v23 = vadd.f32 %v962_v24, %v3339_v27 }
 0x2fd   :  { %v1737_v18 = vmul.f32 -1.442695, %v988_v17 }
 0x2fe   :  { %v1811_v12 = vpop.eup %1810 }
 0x2ff   :  { %v1813_v20 = vpop.eup %1812  ;;  %v992_v19 = vadd.f32 1.0, %v1811_v12  ;;  %1814 = vpow2.f32 %v1737_v18 }
 0x300   :  { %v1011_v28 = vadd.f32 1.0, %v1813_v20 }
 0x301   :  { %1816 = vrcp.f32 %v992_v19  ;;  %v1004_v17 = vand.u32 2147483648, %v992_v19  ;;  %v1002_v18 = vand.u32 2147483647, %v992_v19  ;;  %vm998_vm6 = vweird.f32 %v992_v19 }
 0x302   :  { %1818 = vrcp.f32 %v1011_v28  ;;  %v1023_v14 = vand.u32 2147483648, %v1011_v28  ;;  %v1021_v25 = vand.u32 2147483647, %v1011_v28  ;;  %vm1017_vm7 = vweird.f32 %v1011_v28 }
 0x303   :  { %v1005_v24 = vor.u32 1.1754944e-38, %v1004_v17  ;;  %vm1003_vm10 = vcmp.eq.f32.partialorder %v1002_v18, 8.507059e+37 }
 0x304   :  { %vm1022_vm11 = vcmp.eq.f32.partialorder %v1021_v25, 8.507059e+37 }
 0x305   :  { %v1815_v8 = vpop.eup %1814 }
 0x306   :  { %v1031_v11 = vadd.f32 1.0, %v1815_v8 }
 0x307   :  { %v1817_v7 = vpop.eup %1816 }
 0x308   :  { %v1819_v10 = vpop.eup %1818  ;;  %v994_v22 = vmul.f32 %v1817_v7, %v992_v19  ;;  %1820 = vrcp.f32 %v1031_v11  ;;  %vm999_vm4 = vweird.f32 %v1817_v7  ;;  %v1043_v17 = vand.u32 2147483648, %v1031_v11 }
 0x309   :  { %v1013_v5 = vmul.f32 %v1819_v10, %v1011_v28  ;;  %1822 = vtanh.f32 %v987_v23  ;;  %vm1018_vm5 = vweird.f32 %v1819_v10  ;;  %vm1000_vm8 = vmor %vm998_vm6, %vm999_vm4  ;;  %vm1037_vm13 = vweird.f32 %v1031_v11 }
 0x30a   :  { %v995_v15 = vsub.f32 1.0, %v994_v22  ;;  %vm1019_vm9 = vmor %vm1017_vm7, %vm1018_vm5  ;;  %v1024_v22 = vor.u32 1.1754944e-38, %v1023_v14  ;;  %v1044_v18 = vor.u32 1.1754944e-38, %v1043_v17  ;;  %v3358_v17 = vld [vmem:[#allocation36_spill] sm:$0xff] }
 0x30b   :  { %v1014_v21 = vsub.f32 1.0, %v1013_v5 }
 0x30c   :  { %v996_v12 = vmul.f32 %v1817_v7, %v995_v15 }
 0x30d   :  { %v1015_v20 = vmul.f32 %v1819_v10, %v1014_v21 }
 0x30e   :  { %v1821_v16 = vpop.eup %1820  ;;  %v997_v8 = vadd.f32 %v1817_v7, %v996_v12 }
 0x30f   :  { %v1016_v27 = vadd.f32 %v1819_v10, %v1015_v20  ;;  %v1033_v6 = vmul.f32 %v1821_v16, %v1031_v11  ;;  %v1823_v23 = vpop.eup %1822  ;;  %vm1038_vm12 = vweird.f32 %v1821_v16  ;;  %v3347_v20 = vld [vmem:[#allocation26_spill] sm:$0xff] }
 0x310   :  { %v1001_v5 = vsel %vm1000_vm8, %v1817_v7, %v997_v8  ;;  %v1041_v7 = vand.u32 2147483647, %v1031_v11  ;;  %vm1039_vm14 = vmor %vm1037_vm13, %vm1038_vm12  ;;  %v3346_v11 = vld [vmem:[#allocation24_spill] sm:$0xff]  ;;  %v3348_v8 = vld [vmem:[#allocation25_spill] sm:$0xff] }
 0x311   :  { %v1006_v4 = vsel %vm1003_vm10, %v1005_v24, %v1001_v5  ;;  %v1020_v15 = vsel %vm1019_vm9, %v1819_v10, %v1016_v27  ;;  %v1034_v3 = vsub.f32 1.0, %v1033_v6  ;;  %v3349_v24 = vld [vmem:[#allocation27_spill] sm:$0xff]  ;;  %v3350_v27 = vld [vmem:[#allocation28_spill] sm:$0xff]  ;;  %v3352_v5 = vld [vmem:[#allocation29_spill] sm:$0xff] }
 0x312   :  { %v1025_v21 = vsel %vm1022_vm11, %v1024_v22, %v1020_v15  ;;  %v1048_v2 = vmul.f32 %v1823_v23, %v1006_v4  ;;  %vm1042_vm15 = vcmp.eq.f32.partialorder %v1041_v7, 8.507059e+37  ;;  %v3344_v4 = vld [vmem:[#allocation21_spill] sm:$0xff]  ;;  %v3351_v22 = vld [vmem:[#allocation30_spill] sm:$0xff]  ;;  %v3353_v23 = vld [vmem:[#allocation31_spill] sm:$0xff] }
 0x313   :  { %v1047_v29 = vmul.f32 %v1025_v21, %v2831_v9  ;;  %v1035_v12 = vmul.f32 %v1821_v16, %v1034_v3  ;;  %v3343_v3 = vld [vmem:[#allocation22_spill] sm:$0xff]  ;;  %v3354_v15 = vld [vmem:[#allocation32_spill] sm:$0xff]  ;;  %v3359_v7 = vld [vmem:[#allocation37_spill] sm:$0xff] }
 0x314   :  { %v3355_v21 = vld [vmem:[#allocation34_spill] sm:$0xff] }
 0x315   :  { %v2919_v19 = vadd.f32 %v1048_v2, %v1047_v29  ;;  %v1036_v28 = vadd.f32 %v1821_v16, %v1035_v12  ;;  %v3341_v29 = vld [vmem:[#allocation19_spill] sm:$0xff]  ;;  %v3342_v2 = vld [vmem:[#allocation20_spill] sm:$0xff]  ;;  %v3356_v12 = vld [vmem:[#allocation33_spill] sm:$0xff] }
 0x317   :  { %1824 = vtanh.f32 %v2919_v19  ;;  %v1040_v14 = vsel %vm1039_vm14, %v1821_v16, %v1036_v28  ;;  %v3345_v16 = vld [vmem:[#allocation23_spill] sm:$0xff] }
 0x318   :  { %v1045_v6 = vsel %vm1042_vm15, %v1044_v18, %v1040_v14  ;;  %v3357_v28 = vld [vmem:[#allocation35_spill] sm:$0xff]  ;;  %v3360_v14 = vld [vmem:[#allocation38_spill] sm:$0xff] }
 0x319   :  { %v3361_v18 = vld [vmem:[#allocation39_spill] sm:$0xff] }
 0x31d   :  { %v1825_v25 = vpop.eup %1824 }
 0x31e   :  { %v1051_v10 = vmul.f32 %v1825_v25, %v1045_v6  ;;  %v3362_v25 = vld [vmem:[#allocation40_spill] sm:$0xff]  ;;  %v3363_v6 = vld [vmem:[#allocation41_spill] sm:$0xff] }
 0x320   :  { %1074 = vmatmul.f32.vlgmr.msrb.gmra.mxu0 %v1051_v10  ;;  %1094 = vmatmul.f32.vlgmr.msrb.gmra.mxu1 %v1051_v10  ;;  %v2923_v9 = vadd.f32 %v1051_v10, %v2836_v1  ;;  %v3340_v1 = vld [vmem:[#allocation17_spill] sm:$0xff] }
 0x321   :  { %1114 = vmatmul.f32.vlgmr.msrb.gmra.mxu2 %v1051_v10  ;;  %1134 = vmatmul.f32.vlgmr.msrb.gmra.mxu3 %v1051_v10  ;;  %v3364_v10 = vld [vmem:[#allocation42_spill] sm:$0xff] }
 0x322   :  { %1364 = vmatpush.msrb.mxu0 %v2646_v26  ;;  %1384 = vmatpush.msrb.mxu1 %v2649_v30 }
 0x323   :  { %1404 = vmatpush.msrb.mxu2 %v2652_v31  ;;  %1424 = vmatpush.msrb.mxu3 %v2655_v32 }
 0x324   :  { %1365 = vmatpush.msrb.mxu0 %v2658_v33  ;;  %1385 = vmatpush.msrb.mxu1 %v2661_v34 }
 0x325   :  { %1405 = vmatpush.msrb.mxu2 %v2664_v35  ;;  %1425 = vmatpush.msrb.mxu3 %v2667_v36 }
 0x326   :  { %1366 = vmatpush.msrb.mxu0 %v2670_v37  ;;  %1386 = vmatpush.msrb.mxu1 %v2673_v38 }
 0x327   :  { %1406 = vmatpush.msrb.mxu2 %v2676_v40  ;;  %1426 = vmatpush.msrb.mxu3 %v2679_v41 }
 0x328   :  { %1367 = vmatpush.msrb.mxu0 %v2682_v42  ;;  %1387 = vmatpush.msrb.mxu1 %v2685_v43 }
 0x329   :  { %1407 = vmatpush.msrb.mxu2 %v2688_v47  ;;  %1427 = vmatpush.msrb.mxu3 %v2691_v0 }
 0x32a   :  { %1368 = vmatpush.msrb.mxu0 %v2694_v46  ;;  %1388 = vmatpush.msrb.mxu1 %v2697_v60 }
 0x32b   :  { %1408 = vmatpush.msrb.mxu2 %v2700_v13  ;;  %1428 = vmatpush.msrb.mxu3 %v2703_v61 }
 0x32c   :  { %1369 = vmatpush.msrb.mxu0 %v2706_v39  ;;  %1389 = vmatpush.msrb.mxu1 %v2709_v50 }
 0x32d   :  { %1409 = vmatpush.msrb.mxu2 %v2712_v63  ;;  %1429 = vmatpush.msrb.mxu3 %v2715_v49 }
 0x32e   :  { %1370 = vmatpush.msrb.mxu0 %v2718_v44  ;;  %1390 = vmatpush.msrb.mxu1 %v2721_v45 }
 0x32f   :  { %1410 = vmatpush.msrb.mxu2 %v2724_v52  ;;  %1430 = vmatpush.msrb.mxu3 %v2727_v51 }
 0x330   :  { %1371 = vmatpush.msrb.mxu0 %v2730_v56  ;;  %1391 = vmatpush.msrb.mxu1 %v2733_v53 }
 0x331   :  { %1411 = vmatpush.msrb.mxu2 %v2736_v48  ;;  %1431 = vmatpush.msrb.mxu3 %v2739_v54 }
 0x332   :  { %1372 = vmatpush.msrb.mxu0 %v2742_v57  ;;  %1392 = vmatpush.msrb.mxu1 %v2745_v58 }
 0x333   :  { %1412 = vmatpush.msrb.mxu2 %v2748_v62  ;;  %1432 = vmatpush.msrb.mxu3 %v2751_v59 }
 0x334   :  { %1373 = vmatpush.msrb.mxu0 %v3308_v55  ;;  %1393 = vmatpush.msrb.mxu1 %v3340_v1 }
 0x335   :  { %1413 = vmatpush.msrb.mxu2 %v3341_v29  ;;  %1433 = vmatpush.msrb.mxu3 %v3342_v2 }
 0x336   :  { %1374 = vmatpush.msrb.mxu0 %v3343_v3  ;;  %1394 = vmatpush.msrb.mxu1 %v3344_v4 }
 0x337   :  { %1414 = vmatpush.msrb.mxu2 %v3345_v16  ;;  %1434 = vmatpush.msrb.mxu3 %v3346_v11 }
 0x338   :  { %1375 = vmatpush.msrb.mxu0 %v3347_v20  ;;  %1395 = vmatpush.msrb.mxu1 %v3348_v8 }
 0x339   :  { %1415 = vmatpush.msrb.mxu2 %v3349_v24  ;;  %1435 = vmatpush.msrb.mxu3 %v3350_v27 }
 0x33a   :  { %1376 = vmatpush.msrb.mxu0 %v3351_v22  ;;  %1396 = vmatpush.msrb.mxu1 %v3352_v5  ;;  %v3368_v5 = vld [vmem:[#allocation56_spill] sm:$0xff] }
 0x33b   :  { %1416 = vmatpush.msrb.mxu2 %v3353_v23  ;;  %1436 = vmatpush.msrb.mxu3 %v3354_v15  ;;  %v3365_v15 = vld [vmem:[#allocation43_spill] sm:$0xff] }
 0x33c   :  { %1377 = vmatpush.msrb.mxu0 %v3355_v21  ;;  %1397 = vmatpush.msrb.mxu1 %v3356_v12  ;;  %v3366_v21 = vld [vmem:[#allocation44_spill] sm:$0xff]  ;;  %v3367_v23 = vld [vmem:[#allocation55_spill] sm:$0xff] }
 0x33d   :  { %1417 = vmatpush.msrb.mxu2 %v3357_v28  ;;  %1437 = vmatpush.msrb.mxu3 %v3358_v17 }
 0x33e   :  { %1378 = vmatpush.msrb.mxu0 %v3359_v7  ;;  %1398 = vmatpush.msrb.mxu1 %v3360_v14 }
 0x33f   :  { %1418 = vmatpush.msrb.mxu2 %v3361_v18  ;;  %1438 = vmatpush.msrb.mxu3 %v3362_v25  ;;  %v3369_v25 = vld [vmem:[#allocation58_spill] sm:$0xff] }
 0x340   :  { %1379 = vmatpush.msrb.mxu0 %v3363_v6  ;;  %1399 = vmatpush.msrb.mxu1 %v3364_v10 }
 0x341   :  { %1419 = vmatpush.msrb.mxu2 %v3365_v15  ;;  %1439 = vmatpush.msrb.mxu3 %v3366_v21 }
 0x39d   :  { %v1075_v12 = vpop.f32.mrf.mxu0  ;;  %v1095_v28 = vpop.f32.mrf.mxu1 }
 0x39e   :  { %v1138_v17 = vadd.f32 %v1075_v12, %v3367_v23  ;;  %v1139_v7 = vadd.f32 %v1095_v28, %v3368_v5  ;;  %v3370_v5 = vld [vmem:[#allocation57_spill] sm:$0xff] }
 0x3a0   :  { %v1738_v22 = vmul.f32 -1.442695, %v1138_v17  ;;  %v1739_v14 = vmul.f32 -1.442695, %v1139_v7 }
 0x3a2   :  { %1826 = vpow2.f32 %v1738_v22 }
 0x3a3   :  { %1828 = vpow2.f32 %v1739_v14 }
 0x3a4   :  { %v1135_v18 = vpop.f32.mrf.mxu3  ;;  %v1115_v21 = vpop.f32.mrf.mxu2 }
 0x3a5   :  { %v1141_v27 = vadd.f32 %v1135_v18, %v3369_v25  ;;  %v1140_v28 = vadd.f32 %v1115_v21, %v3370_v5 }
 0x3a7   :  { %v1740_v6 = vmul.f32 -1.442695, %v1141_v27 }
 0x3a8   :  { %v1827_v24 = vpop.eup %1826 }
 0x3a9   :  { %v1829_v10 = vpop.eup %1828  ;;  %v1145_v8 = vadd.f32 1.0, %v1827_v24  ;;  %1830 = vpow2.f32 %v1740_v6 }
 0x3aa   :  { %v1164_v15 = vadd.f32 1.0, %v1829_v10 }
 0x3ab   :  { %1832 = vrcp.f32 %v1145_v8  ;;  %v1157_v27 = vand.u32 2147483648, %v1145_v8  ;;  %v1155_v6 = vand.u32 2147483647, %v1145_v8  ;;  %vm1151_vm2 = vweird.f32 %v1145_v8 }
 0x3ac   :  { %1834 = vrcp.f32 %v1164_v15  ;;  %v1176_v25 = vand.u32 2147483648, %v1164_v15  ;;  %v1174_v11 = vand.u32 2147483647, %v1164_v15  ;;  %vm1170_vm3 = vweird.f32 %v1164_v15 }
 0x3ad   :  { %v1158_v21 = vor.u32 1.1754944e-38, %v1157_v27  ;;  %vm1156_vm6 = vcmp.eq.f32.partialorder %v1155_v6, 8.507059e+37 }
 0x3ae   :  { %vm1175_vm7 = vcmp.eq.f32.partialorder %v1174_v11, 8.507059e+37 }
 0x3af   :  { %v1831_v20 = vpop.eup %1830 }
 0x3b0   :  { %v1184_v23 = vadd.f32 1.0, %v1831_v20 }
 0x3b1   :  { %v1833_v12 = vpop.eup %1832 }
 0x3b2   :  { %v1835_v17 = vpop.eup %1834  ;;  %v1147_v22 = vmul.f32 %v1833_v12, %v1145_v8  ;;  %1836 = vrcp.f32 %v1184_v23  ;;  %vm1152_vm0 = vweird.f32 %v1833_v12  ;;  %v1196_v27 = vand.u32 2147483648, %v1184_v23 }
 0x3b3   :  { %v1166_v7 = vmul.f32 %v1835_v17, %v1164_v15  ;;  %1838 = vtanh.f32 %v1140_v28  ;;  %vm1171_vm1 = vweird.f32 %v1835_v17  ;;  %vm1153_vm4 = vmor %vm1151_vm2, %vm1152_vm0  ;;  %vm1190_vm9 = vweird.f32 %v1184_v23 }
 0x3b4   :  { %v1148_v14 = vsub.f32 1.0, %v1147_v22  ;;  %vm1172_vm5 = vmor %vm1170_vm3, %vm1171_vm1  ;;  %v1177_v22 = vor.u32 1.1754944e-38, %v1176_v25  ;;  %v1197_v6 = vor.u32 1.1754944e-38, %v1196_v27 }
 0x3b5   :  { %v1167_v18 = vsub.f32 1.0, %v1166_v7 }
 0x3b6   :  { %v1149_v24 = vmul.f32 %v1833_v12, %v1148_v14 }
 0x3b7   :  { %v1168_v10 = vmul.f32 %v1835_v17, %v1167_v18 }
 0x3b8   :  { %v1837_v16 = vpop.eup %1836  ;;  %v1150_v20 = vadd.f32 %v1833_v12, %v1149_v24 }
 0x3b9   :  { %v1169_v5 = vadd.f32 %v1835_v17, %v1168_v10  ;;  %v1186_v4 = vmul.f32 %v1837_v16, %v1184_v23  ;;  %v1839_v28 = vpop.eup %1838  ;;  %vm1191_vm8 = vweird.f32 %v1837_v16 }
 0x3ba   :  { %v1154_v7 = vsel %vm1153_vm4, %v1833_v12, %v1150_v20  ;;  %v1194_v12 = vand.u32 2147483647, %v1184_v23  ;;  %vm1192_vm10 = vmor %vm1190_vm9, %vm1191_vm8 }
 0x3bb   :  { %v1159_v3 = vsel %vm1156_vm6, %v1158_v21, %v1154_v7  ;;  %v1173_v14 = vsel %vm1172_vm5, %v1835_v17, %v1169_v5  ;;  %v1187_v2 = vsub.f32 1.0, %v1186_v4  ;;  %v3401_v5 = vld [vmem:[#allocation61_spill] sm:$0xff] }
 0x3bc   :  { %v1178_v18 = vsel %vm1175_vm7, %v1177_v22, %v1173_v14  ;;  %v1201_v29 = vmul.f32 %v1839_v28, %v1159_v3  ;;  %vm1195_vm11 = vcmp.eq.f32.partialorder %v1194_v12, 8.507059e+37 }
 0x3bd   :  { %v1200_v1 = vmul.f32 %v1178_v18, %v2919_v19  ;;  %v1188_v24 = vmul.f32 %v1837_v16, %v1187_v2 }
 0x3bf   :  { %v2994_v8 = vadd.f32 %v1201_v29, %v1200_v1  ;;  %v1189_v15 = vadd.f32 %v1837_v16, %v1188_v24 }
 0x3c1   :  { %1840 = vtanh.f32 %v2994_v8  ;;  %v1193_v25 = vsel %vm1192_vm10, %v1837_v16, %v1189_v15 }
 0x3c2   :  { %v1198_v4 = vsel %vm1195_vm11, %v1197_v6, %v1193_v25 }
 0x3c7   :  { %v1841_v11 = vpop.eup %1840 }
 0x3c8   :  { %v1204_v17 = vmul.f32 %v1841_v11, %v1198_v4 }
 0x3ca   :  { %1227 = vmatmul.f32.vlgmr.msra.gmra.mxu0 %v1204_v17  ;;  %1247 = vmatmul.f32.vlgmr.msra.gmra.mxu1 %v1204_v17  ;;  %v2998_v19 = vadd.f32 %v1204_v17, %v2923_v9 }
 0x3cb   :  { %1267 = vmatmul.f32.vlgmr.msra.gmra.mxu2 %v1204_v17  ;;  %1287 = vmatmul.f32.vlgmr.msra.gmra.mxu3 %v1204_v17 }
 0x3cc   :  { %1517 = vmatpush.msra.mxu0 %v2646_v26  ;;  %1537 = vmatpush.msra.mxu1 %v2649_v30  ;;  %v3371_v26 = vld [vmem:[#allocation17_spill] sm:$0xff]  ;;  %v3372_v30 = vld [vmem:[#allocation19_spill] sm:$0xff] }
 0x3cd   :  { %1557 = vmatpush.msra.mxu2 %v2652_v31  ;;  %1577 = vmatpush.msra.mxu3 %v2655_v32  ;;  %v3373_v31 = vld [vmem:[#allocation20_spill] sm:$0xff]  ;;  %v3374_v32 = vld [vmem:[#allocation22_spill] sm:$0xff] }
 0x3ce   :  { %1518 = vmatpush.msra.mxu0 %v2658_v33  ;;  %1538 = vmatpush.msra.mxu1 %v2661_v34  ;;  %v3375_v33 = vld [vmem:[#allocation21_spill] sm:$0xff]  ;;  %v3376_v34 = vld [vmem:[#allocation23_spill] sm:$0xff] }
 0x3cf   :  { %1558 = vmatpush.msra.mxu2 %v2664_v35  ;;  %1578 = vmatpush.msra.mxu3 %v2667_v36  ;;  %v3377_v35 = vld [vmem:[#allocation24_spill] sm:$0xff]  ;;  %v3378_v36 = vld [vmem:[#allocation26_spill] sm:$0xff] }
 0x3d0   :  { %1519 = vmatpush.msra.mxu0 %v2670_v37  ;;  %1539 = vmatpush.msra.mxu1 %v2673_v38  ;;  %v3379_v37 = vld [vmem:[#allocation25_spill] sm:$0xff]  ;;  %v3380_v38 = vld [vmem:[#allocation27_spill] sm:$0xff] }
 0x3d1   :  { %1559 = vmatpush.msra.mxu2 %v2676_v40  ;;  %1579 = vmatpush.msra.mxu3 %v2679_v41  ;;  %v3381_v40 = vld [vmem:[#allocation28_spill] sm:$0xff]  ;;  %v3382_v41 = vld [vmem:[#allocation30_spill] sm:$0xff] }
 0x3d2   :  { %1520 = vmatpush.msra.mxu0 %v2682_v42  ;;  %1540 = vmatpush.msra.mxu1 %v2685_v43  ;;  %v3383_v42 = vld [vmem:[#allocation29_spill] sm:$0xff]  ;;  %v3384_v43 = vld [vmem:[#allocation31_spill] sm:$0xff] }
 0x3d3   :  { %1560 = vmatpush.msra.mxu2 %v2688_v47  ;;  %1580 = vmatpush.msra.mxu3 %v2691_v0  ;;  %v3385_v47 = vld [vmem:[#allocation32_spill] sm:$0xff]  ;;  %v3386_v0 = vld [vmem:[#allocation34_spill] sm:$0xff] }
 0x3d4   :  { %1521 = vmatpush.msra.mxu0 %v2694_v46  ;;  %1541 = vmatpush.msra.mxu1 %v2697_v60  ;;  %v3387_v46 = vld [vmem:[#allocation33_spill] sm:$0xff]  ;;  %v3388_v60 = vld [vmem:[#allocation35_spill] sm:$0xff] }
 0x3d5   :  { %1561 = vmatpush.msra.mxu2 %v2700_v13  ;;  %1581 = vmatpush.msra.mxu3 %v2703_v61  ;;  %v3389_v13 = vld [vmem:[#allocation36_spill] sm:$0xff]  ;;  %v3390_v61 = vld [vmem:[#allocation37_spill] sm:$0xff] }
 0x3d6   :  { %1522 = vmatpush.msra.mxu0 %v2706_v39  ;;  %1542 = vmatpush.msra.mxu1 %v2709_v50  ;;  %v3391_v39 = vld [vmem:[#allocation38_spill] sm:$0xff]  ;;  %v3392_v50 = vld [vmem:[#allocation39_spill] sm:$0xff] }
 0x3d7   :  { %1562 = vmatpush.msra.mxu2 %v2712_v63  ;;  %1582 = vmatpush.msra.mxu3 %v2715_v49  ;;  %v3393_v63 = vld [vmem:[#allocation40_spill] sm:$0xff]  ;;  %v3394_v49 = vld [vmem:[#allocation41_spill] sm:$0xff] }
 0x3d8   :  { %1523 = vmatpush.msra.mxu0 %v2718_v44  ;;  %1543 = vmatpush.msra.mxu1 %v2721_v45  ;;  %v3395_v44 = vld [vmem:[#allocation42_spill] sm:$0xff]  ;;  %v3396_v45 = vld [vmem:[#allocation43_spill] sm:$0xff] }
 0x3d9   :  { %1563 = vmatpush.msra.mxu2 %v2724_v52  ;;  %1583 = vmatpush.msra.mxu3 %v2727_v51  ;;  %v3397_v52 = vld [vmem:[#allocation44_spill] sm:$0xff] }
 0x3da   :  { %1524 = vmatpush.msra.mxu0 %v2730_v56  ;;  %1544 = vmatpush.msra.mxu1 %v2733_v53  ;;  %v3398_v53 = vld [vmem:[#allocation59_spill] sm:$0xff] }
 0x3db   :  { %1564 = vmatpush.msra.mxu2 %v2736_v48  ;;  %1584 = vmatpush.msra.mxu3 %v2739_v54  ;;  %v3399_v54 = vld [vmem:[#allocation60_spill] sm:$0xff] }
 0x3dc   :  { %1525 = vmatpush.msra.mxu0 %v2742_v57  ;;  %1545 = vmatpush.msra.mxu1 %v2745_v58 }
 0x3dd   :  { %1565 = vmatpush.msra.mxu2 %v2748_v62  ;;  %1585 = vmatpush.msra.mxu3 %v2751_v59 }
 0x3de   :  { %1526 = vmatpush.msra.mxu0 %v3308_v55  ;;  %1546 = vmatpush.msra.mxu1 %v3371_v26  ;;  %v3400_v55 = vld [vmem:[#allocation62_spill] sm:$0xff] }
 0x3df   :  { %1566 = vmatpush.msra.mxu2 %v3372_v30  ;;  %1586 = vmatpush.msra.mxu3 %v3373_v31 }
 0x3e0   :  { %1527 = vmatpush.msra.mxu0 %v3374_v32  ;;  %1547 = vmatpush.msra.mxu1 %v3375_v33 }
 0x3e1   :  { %1567 = vmatpush.msra.mxu2 %v3376_v34  ;;  %1587 = vmatpush.msra.mxu3 %v3377_v35 }
 0x3e2   :  { %1528 = vmatpush.msra.mxu0 %v3378_v36  ;;  %1548 = vmatpush.msra.mxu1 %v3379_v37 }
 0x3e3   :  { %1568 = vmatpush.msra.mxu2 %v3380_v38  ;;  %1588 = vmatpush.msra.mxu3 %v3381_v40 }
 0x3e4   :  { %1529 = vmatpush.msra.mxu0 %v3382_v41  ;;  %1549 = vmatpush.msra.mxu1 %v3383_v42 }
 0x3e5   :  { %1569 = vmatpush.msra.mxu2 %v3384_v43  ;;  %1589 = vmatpush.msra.mxu3 %v3385_v47 }
 0x3e6   :  { %1530 = vmatpush.msra.mxu0 %v3386_v0  ;;  %1550 = vmatpush.msra.mxu1 %v3387_v46 }
 0x3e7   :  { %1570 = vmatpush.msra.mxu2 %v3388_v60  ;;  %1590 = vmatpush.msra.mxu3 %v3389_v13 }
 0x3e8   :  { %1531 = vmatpush.msra.mxu0 %v3390_v61  ;;  %1551 = vmatpush.msra.mxu1 %v3391_v39 }
 0x3e9   :  { %1571 = vmatpush.msra.mxu2 %v3392_v50  ;;  %1591 = vmatpush.msra.mxu3 %v3393_v63 }
 0x3ea   :  { %1532 = vmatpush.msra.mxu0 %v3394_v49  ;;  %1552 = vmatpush.msra.mxu1 %v3395_v44  ;;  %v3402_v44 = vld [vmem:[#allocation63_spill] sm:$0xff] }
 0x3eb   :  { %1572 = vmatpush.msra.mxu2 %v3396_v45  ;;  %1592 = vmatpush.msra.mxu3 %v3397_v52  ;;  %v3403_v52 = vld [vmem:[#allocation64_spill] sm:$0xff] }
 0x447   :  { %v1228_v51 = vpop.f32.mrf.mxu0  ;;  %v1248_v56 = vpop.f32.mrf.mxu1 }
 0x448   :  { %v1291_v48 = vadd.f32 %v1228_v51, %v3398_v53  ;;  %v1292_v57 = vadd.f32 %v1248_v56, %v3399_v54  ;;  %v3404_v54 = vld [vmem:[#allocation66_spill] sm:$0xff] }
 0x44a   :  { %v1741_v58 = vmul.f32 -1.442695, %v1291_v48  ;;  %v1742_v62 = vmul.f32 -1.442695, %v1292_v57 }
 0x44c   :  { %1842 = vpow2.f32 %v1741_v58 }
 0x44d   :  { %1844 = vpow2.f32 %v1742_v62 }
 0x44e   :  { %v1288_v59 = vpop.f32.mrf.mxu3  ;;  %v1268_v23 = vpop.f32.mrf.mxu2 }
 0x44f   :  { %v1294_v9 = vadd.f32 %v1288_v59, %v3400_v55  ;;  %v1293_v22 = vadd.f32 %v1268_v23, %v3401_v5 }
 0x451   :  { %v1743_v1 = vmul.f32 -1.442695, %v1294_v9 }
 0x452   :  { %v1843_v29 = vpop.eup %1842 }
 0x453   :  { %v1845_v2 = vpop.eup %1844  ;;  %v1298_v3 = vadd.f32 1.0, %v1843_v29  ;;  %1846 = vpow2.f32 %v1743_v1 }
 0x454   :  { %v1317_v16 = vadd.f32 1.0, %v1845_v2 }
 0x455   :  { %1848 = vrcp.f32 %v1298_v3  ;;  %v1310_v15 = vand.u32 2147483648, %v1298_v3  ;;  %v1308_v25 = vand.u32 2147483647, %v1298_v3  ;;  %vm1304_vm14 = vweird.f32 %v1298_v3 }
 0x456   :  { %1850 = vrcp.f32 %v1317_v16  ;;  %v1329_v27 = vand.u32 2147483648, %v1317_v16  ;;  %v1327_v11 = vand.u32 2147483647, %v1317_v16  ;;  %vm1323_vm15 = vweird.f32 %v1317_v16 }
 0x457   :  { %v1311_v26 = vor.u32 1.1754944e-38, %v1310_v15  ;;  %vm1309_vm2 = vcmp.eq.f32.partialorder %v1308_v25, 8.507059e+37 }
 0x458   :  { %v1330_v32 = vor.u32 1.1754944e-38, %v1329_v27  ;;  %vm1328_vm3 = vcmp.eq.f32.partialorder %v1327_v11, 8.507059e+37 }
 0x459   :  { %v1847_v10 = vpop.eup %1846 }
 0x45a   :  { %v1337_v20 = vadd.f32 1.0, %v1847_v10 }
 0x45b   :  { %v1849_v21 = vpop.eup %1848 }
 0x45c   :  { %v1851_v7 = vpop.eup %1850  ;;  %v1300_v28 = vmul.f32 %v1849_v21, %v1298_v3  ;;  %1852 = vrcp.f32 %v1337_v20  ;;  %vm1305_vm12 = vweird.f32 %v1849_v21  ;;  %v1349_v0 = vand.u32 2147483648, %v1337_v20  ;;  %v3405_v3 = vld [vmem:[#allocation65_spill] sm:$0xff] }
 0x45d   :  { %v1319_v14 = vmul.f32 %v1851_v7, %v1317_v16  ;;  %1854 = vtanh.f32 %v1293_v22  ;;  %vm1324_vm13 = vweird.f32 %v1851_v7  ;;  %vm1306_vm0 = vmor %vm1304_vm14, %vm1305_vm12  ;;  %vm1343_vm5 = vweird.f32 %v1337_v20 }
 0x45e   :  { %v1301_v18 = vsub.f32 1.0, %v1300_v28  ;;  %vm1325_vm1 = vmor %vm1323_vm15, %vm1324_vm13  ;;  %v1347_v46 = vand.u32 2147483647, %v1337_v20  ;;  %v1350_v13 = vor.u32 1.1754944e-38, %v1349_v0 }
 0x45f   :  { %v1320_v24 = vsub.f32 1.0, %v1319_v14 }
 0x460   :  { %v1302_v12 = vmul.f32 %v1849_v21, %v1301_v18  ;;  %vm1348_vm7 = vcmp.eq.f32.partialorder %v1347_v46, 8.507059e+37 }
 0x461   :  { %v1321_v6 = vmul.f32 %v1851_v7, %v1320_v24 }
 0x462   :  { %v1853_v4 = vpop.eup %1852  ;;  %v1303_v17 = vadd.f32 %v1849_v21, %v1302_v12 }
 0x463   :  { %v1322_v30 = vadd.f32 %v1851_v7, %v1321_v6  ;;  %v1339_v31 = vmul.f32 %v1853_v4, %v1337_v20  ;;  %v1855_v34 = vpop.eup %1854  ;;  %vm1344_vm4 = vweird.f32 %v1853_v4 }
 0x464   :  { %v1307_v33 = vsel %vm1306_vm0, %v1849_v21, %v1303_v17  ;;  %vm1345_vm6 = vmor %vm1343_vm5, %vm1344_vm4 }
 0x465   :  { %v1312_v35 = vsel %vm1309_vm2, %v1311_v26, %v1307_v33  ;;  %v1326_v36 = vsel %vm1325_vm1, %v1851_v7, %v1322_v30  ;;  %v1340_v37 = vsub.f32 1.0, %v1339_v31 }
 0x466   :  { %v1331_v38 = vsel %vm1328_vm3, %v1330_v32, %v1326_v36  ;;  %v1354_v40 = vmul.f32 %v1855_v34, %v1312_v35 }
 0x467   :  { %v1353_v41 = vmul.f32 %v1331_v38, %v2994_v8  ;;  %v1341_v42 = vmul.f32 %v1853_v4, %v1340_v37 }
 0x469   :  { %v3069_v43 = vadd.f32 %v1354_v40, %v1353_v41  ;;  %v1342_v47 = vadd.f32 %v1853_v4, %v1341_v42 }
 0x46b   :  { %1856 = vtanh.f32 %v3069_v43  ;;  %v1346_v60 = vsel %vm1345_vm6, %v1853_v4, %v1342_v47 }
 0x46c   :  { %v1351_v39 = vsel %vm1348_vm7, %v1350_v13, %v1346_v60  ;;  %v1681_v60 = vld [vmem:[#allocation11 + $0x78] sm:$0xff]  ;;  %v1680_v13 = vld [vmem:[#allocation11 + $0x70] sm:$0xff] }
 0x471   :  { %v1857_v61 = vpop.eup %1856 }
 0x472   :  { %v1357_v50 = vmul.f32 %v1857_v61, %v1351_v39  ;;  %v1679_v61 = vld [vmem:[#allocation11 + $0x68] sm:$0xff]  ;;  %v1678_v39 = vld [vmem:[#allocation11 + $0x60] sm:$0xff] }
 0x474   :  { %1380 = vmatmul.f32.vlgmr.msrb.gmra.mxu0 %v1357_v50  ;;  %1400 = vmatmul.f32.vlgmr.msrb.gmra.mxu1 %v1357_v50  ;;  %v3073_v8 = vadd.f32 %v1357_v50, %v2998_v19 }
 0x475   :  { %1420 = vmatmul.f32.vlgmr.msrb.gmra.mxu2 %v1357_v50  ;;  %1440 = vmatmul.f32.vlgmr.msrb.gmra.mxu3 %v1357_v50  ;;  %v1677_v50 = vld [vmem:[#allocation11 + $0x58] sm:$0xff] }
 0x476   :  { %1686 = vmatpush.msrb.mxu0 %v1681_v60 }
 0x478   :  { %1687 = vmatpush.msrb.mxu0 %v1680_v13 }
 0x47a   :  { %1688 = vmatpush.msrb.mxu0 %v1679_v61 }
 0x47c   :  { %1689 = vmatpush.msrb.mxu0 %v1678_v39 }
 0x47e   :  { %1690 = vmatpush.msrb.mxu0 %v1677_v50 }
 0x4f1   :  { %v1381_v63 = vpop.f32.mrf.mxu0  ;;  %v1401_v49 = vpop.f32.mrf.mxu1 }
 0x4f2   :  { %v1444_v45 = vadd.f32 %v1381_v63, %v3402_v44  ;;  %v1445_v51 = vadd.f32 %v1401_v49, %v3403_v52  ;;  %v1676_v63 = vld [vmem:[#allocation11 + $0x50] sm:$0xff]  ;;  %v1675_v49 = vld [vmem:[#allocation11 + $0x48] sm:$0xff]  ;;  %v3406_v52 = vld [vmem:[#allocation67_spill] sm:$0xff] }
 0x4f3   :  { %1691 = vmatpush.msrb.mxu0 %v1676_v63 }
 0x4f4   :  { %v1744_v56 = vmul.f32 -1.442695, %v1444_v45  ;;  %v1745_v53 = vmul.f32 -1.442695, %v1445_v51 }
 0x4f5   :  { %1692 = vmatpush.msrb.mxu0 %v1675_v49 }
 0x4f6   :  { %1858 = vpow2.f32 %v1744_v56  ;;  %v3407_v56 = vld [vmem:[#allocation68_spill] sm:$0xff] }
 0x4f7   :  { %1860 = vpow2.f32 %v1745_v53 }
 0x4f8   :  { %v1441_v48 = vpop.f32.mrf.mxu3  ;;  %v1421_v9 = vpop.f32.mrf.mxu2 }
 0x4f9   :  { %v1447_v57 = vadd.f32 %v1441_v48, %v3404_v54  ;;  %v1446_v16 = vadd.f32 %v1421_v9, %v3405_v3  ;;  %v1673_v48 = vld [vmem:[#allocation11 + $0x38] sm:$0xff] }
 0x4fb   :  { %v1746_v58 = vmul.f32 -1.442695, %v1447_v57 }
 0x4fc   :  { %v1859_v62 = vpop.eup %1858 }
 0x4fd   :  { %v1861_v59 = vpop.eup %1860  ;;  %v1451_v19 = vadd.f32 1.0, %v1859_v62  ;;  %1862 = vpow2.f32 %v1746_v58  ;;  %v1672_v58 = vld [vmem:[#allocation11 + $0x30] sm:$0xff]  ;;  %v1671_v62 = vld [vmem:[#allocation11 + $0x28] sm:$0xff] }
 0x4fe   :  { %v1470_v55 = vadd.f32 1.0, %v1861_v59  ;;  %v1670_v59 = vld [vmem:[#allocation11 + $0x20] sm:$0xff] }
 0x4ff   :  { %1864 = vrcp.f32 %v1451_v19  ;;  %v1463_v22 = vand.u32 2147483648, %v1451_v19  ;;  %v1461_v14 = vand.u32 2147483647, %v1451_v19  ;;  %vm1457_vm10 = vweird.f32 %v1451_v19 }
 0x500   :  { %1866 = vrcp.f32 %v1470_v55  ;;  %v1482_v7 = vand.u32 2147483648, %v1470_v55  ;;  %v1480_v24 = vand.u32 2147483647, %v1470_v55  ;;  %vm1476_vm11 = vweird.f32 %v1470_v55 }
 0x501   :  { %v1464_v12 = vor.u32 1.1754944e-38, %v1463_v22  ;;  %vm1462_vm14 = vcmp.eq.f32.partialorder %v1461_v14, 8.507059e+37  ;;  %v3409_v14 = vld [vmem:[#allocation69_spill] sm:$0xff] }
 0x502   :  { %v1483_v11 = vor.u32 1.1754944e-38, %v1482_v7  ;;  %vm1481_vm15 = vcmp.eq.f32.partialorder %v1480_v24, 8.507059e+37 }
 0x503   :  { %v1863_v1 = vpop.eup %1862 }
 0x504   :  { %v1490_v29 = vadd.f32 1.0, %v1863_v1  ;;  %v1669_v1 = vld [vmem:[#allocation11 + $0x18] sm:$0xff] }
 0x505   :  { %v1865_v2 = vpop.eup %1864 }
 0x506   :  { %v1867_v23 = vpop.eup %1866  ;;  %v1453_v10 = vmul.f32 %v1865_v2, %v1451_v19  ;;  %1868 = vrcp.f32 %v1490_v29  ;;  %vm1458_vm8 = vweird.f32 %v1865_v2  ;;  %v1502_v38 = vand.u32 2147483648, %v1490_v29 }
 0x507   :  { %v1472_v20 = vmul.f32 %v1867_v23, %v1470_v55  ;;  %1870 = vtanh.f32 %v1446_v16  ;;  %vm1477_vm9 = vweird.f32 %v1867_v23  ;;  %vm1459_vm12 = vmor %vm1457_vm10, %vm1458_vm8  ;;  %vm1496_vm1 = vweird.f32 %v1490_v29  ;;  %v3408_v55 = vld [vmem:[#allocation70_spill] sm:$0xff] }
 0x508   :  { %v1454_v21 = vsub.f32 1.0, %v1453_v10  ;;  %vm1478_vm13 = vmor %vm1476_vm11, %vm1477_vm9  ;;  %v1500_v40 = vand.u32 2147483647, %v1490_v29  ;;  %v1503_v42 = vor.u32 1.1754944e-38, %v1502_v38  ;;  %v1667_v10 = vld [vmem:[#allocation11 + $0x8] sm:$0xff] }
 0x509   :  { %v1473_v5 = vsub.f32 1.0, %v1472_v20 }
 0x50a   :  { %v1455_v28 = vmul.f32 %v1865_v2, %v1454_v21  ;;  %vm1501_vm3 = vcmp.eq.f32.partialorder %v1500_v40, 8.507059e+37  ;;  %v1666_v21 = vld [vmem:[#allocation11] sm:$0xff] }
 0x50b   :  { %v1474_v18 = vmul.f32 %v1867_v23, %v1473_v5 }
 0x50c   :  { %v1869_v15 = vpop.eup %1868  ;;  %v1456_v27 = vadd.f32 %v1865_v2, %v1455_v28 }
 0x50d   :  { %v1475_v25 = vadd.f32 %v1867_v23, %v1474_v18  ;;  %v1492_v6 = vmul.f32 %v1869_v15, %v1490_v29  ;;  %v1871_v17 = vpop.eup %1870  ;;  %vm1497_vm0 = vweird.f32 %v1869_v15 }
 0x50e   :  { %v1460_v4 = vsel %vm1459_vm12, %v1865_v2, %v1456_v27  ;;  %vm1498_vm2 = vmor %vm1496_vm1, %vm1497_vm0  ;;  %v1668_v2 = vld [vmem:[#allocation11 + $0x10] sm:$0xff] }
 0x50f   :  { %v1465_v26 = vsel %vm1462_vm14, %v1464_v12, %v1460_v4  ;;  %v1479_v30 = vsel %vm1478_vm13, %v1867_v23, %v1475_v25  ;;  %v1493_v31 = vsub.f32 1.0, %v1492_v6 }
 0x510   :  { %v1484_v32 = vsel %vm1481_vm15, %v1483_v11, %v1479_v30  ;;  %v1507_v33 = vmul.f32 %v1871_v17, %v1465_v26 }
 0x511   :  { %v1506_v34 = vmul.f32 %v1484_v32, %v3069_v43  ;;  %v1494_v35 = vmul.f32 %v1869_v15, %v1493_v31 }
 0x513   :  { %v3080_v36 = vadd.f32 %v1507_v33, %v1506_v34  ;;  %v1495_v37 = vadd.f32 %v1869_v15, %v1494_v35 }
 0x515   :  { %1872 = vtanh.f32 %v3080_v36  ;;  %v1499_v41 = vsel %vm1498_vm2, %v1869_v15, %v1495_v37 }
 0x516   :  { %v1504_v0 = vsel %vm1501_vm3, %v1503_v42, %v1499_v41 }
 0x51b   :  { %v1873_v47 = vpop.eup %1872 }
 0x51c   :  { %v1510_v46 = vmul.f32 %v1873_v47, %v1504_v0 }
 0x51e   :  { %1533 = vmatmul.f32.vlgmr.msra.gmra.mxu0 %v1510_v46  ;;  %1553 = vmatmul.f32.vlgmr.msra.gmra.mxu1 %v1510_v46  ;;  %v3084_v43 = vadd.f32 %v1510_v46, %v3073_v8  ;;  %v1674_v8 = vld [vmem:[#allocation11 + $0x40] sm:$0xff] }
 0x51f   :  { %1573 = vmatmul.f32.vlgmr.msra.gmra.mxu2 %v1510_v46  ;;  %1593 = vmatmul.f32.vlgmr.msra.gmra.mxu3 %v1510_v46 }
 0x520   :  { %1693 = vmatpush.msrb.mxu0 %v1674_v8 }
 0x522   :  { %1694 = vmatpush.msrb.mxu0 %v1673_v48 }
 0x524   :  { %1695 = vmatpush.msrb.mxu0 %v1672_v58 }
 0x526   :  { %1696 = vmatpush.msrb.mxu0 %v1671_v62 }
 0x528   :  { %1697 = vmatpush.msrb.mxu0 %v1670_v59 }
 0x52a   :  { %1698 = vmatpush.msrb.mxu0 %v1669_v1 }
 0x52c   :  { %1699 = vmatpush.msrb.mxu0 %v1668_v2 }
 0x52e   :  { %1700 = vmatpush.msrb.mxu0 %v1667_v10 }
 0x530   :  { %1701 = vmatpush.msrb.mxu0 %v1666_v21 }
 0x59b   :  { %v1534_v44 = vpop.f32.mrf.mxu0  ;;  %v1554_v45 = vpop.f32.mrf.mxu1 }
 0x59c   :  { %v1597_v51 = vadd.f32 %v1534_v44, %v3406_v52  ;;  %v1598_v53 = vadd.f32 %v1554_v45, %v3407_v56 }
 0x59e   :  { %v1747_v54 = vmul.f32 -1.442695, %v1597_v51  ;;  %v1748_v57 = vmul.f32 -1.442695, %v1598_v53 }
 0x5a0   :  { %1874 = vpow2.f32 %v1747_v54 }
 0x5a1   :  { %1876 = vpow2.f32 %v1748_v57 }
 0x5a2   :  { %v1594_v19 = vpop.f32.mrf.mxu3  ;;  %v1574_v5 = vpop.f32.mrf.mxu2 }
 0x5a3   :  { %v1600_v9 = vadd.f32 %v1594_v19, %v3408_v55  ;;  %v1599_v18 = vadd.f32 %v1574_v5, %v3409_v14 }
 0x5a5   :  { %v1749_v29 = vmul.f32 -1.442695, %v1600_v9 }
 0x5a6   :  { %v1875_v3 = vpop.eup %1874 }
 0x5a7   :  { %v1877_v16 = vpop.eup %1876  ;;  %v1604_v23 = vadd.f32 1.0, %v1875_v3  ;;  %1878 = vpow2.f32 %v1749_v29 }
 0x5a8   :  { %v1623_v20 = vadd.f32 1.0, %v1877_v16 }
 0x5a9   :  { %1880 = vrcp.f32 %v1604_v23  ;;  %v1616_v6 = vand.u32 2147483648, %v1604_v23  ;;  %v1614_v17 = vand.u32 2147483647, %v1604_v23  ;;  %vm1610_vm6 = vweird.f32 %v1604_v23 }
 0x5aa   :  { %1882 = vrcp.f32 %v1623_v20  ;;  %v1635_v11 = vand.u32 2147483648, %v1623_v20  ;;  %v1633_v30 = vand.u32 2147483647, %v1623_v20  ;;  %vm1629_vm7 = vweird.f32 %v1623_v20 }
 0x5ab   :  { %v1617_v33 = vor.u32 1.1754944e-38, %v1616_v6  ;;  %vm1615_vm10 = vcmp.eq.f32.partialorder %v1614_v17, 8.507059e+37 }
 0x5ac   :  { %v1636_v37 = vor.u32 1.1754944e-38, %v1635_v11  ;;  %vm1634_vm11 = vcmp.eq.f32.partialorder %v1633_v30, 8.507059e+37 }
 0x5ad   :  { %v1879_v22 = vpop.eup %1878 }
 0x5ae   :  { %v1643_v7 = vadd.f32 1.0, %v1879_v22 }
 0x5af   :  { %v1881_v28 = vpop.eup %1880 }
 0x5b0   :  { %v1883_v24 = vpop.eup %1882  ;;  %v1606_v15 = vmul.f32 %v1881_v28, %v1604_v23  ;;  %1884 = vrcp.f32 %v1643_v7  ;;  %vm1611_vm4 = vweird.f32 %v1881_v28  ;;  %v1655_v50 = vand.u32 2147483648, %v1643_v7 }
 0x5b1   :  { %v1625_v27 = vmul.f32 %v1883_v24, %v1623_v20  ;;  %1886 = vtanh.f32 %v1599_v18  ;;  %vm1630_vm5 = vweird.f32 %v1883_v24  ;;  %vm1612_vm8 = vmor %vm1610_vm6, %vm1611_vm4  ;;  %vm1649_vm13 = vweird.f32 %v1643_v7 }
 0x5b2   :  { %v1607_v12 = vsub.f32 1.0, %v1606_v15  ;;  %vm1631_vm9 = vmor %vm1629_vm7, %vm1630_vm5  ;;  %v1653_v63 = vand.u32 2147483647, %v1643_v7  ;;  %v1656_v44 = vor.u32 1.1754944e-38, %v1655_v50 }
 0x5b3   :  { %v1626_v25 = vsub.f32 1.0, %v1625_v27 }
 0x5b4   :  { %v1608_v4 = vmul.f32 %v1881_v28, %v1607_v12  ;;  %vm1654_vm15 = vcmp.eq.f32.partialorder %v1653_v63, 8.507059e+37 }
 0x5b5   :  { %v1627_v26 = vmul.f32 %v1883_v24, %v1626_v25 }
 0x5b6   :  { %v1885_v31 = vpop.eup %1884  ;;  %v1609_v32 = vadd.f32 %v1881_v28, %v1608_v4 }
 0x5b7   :  { %v1628_v34 = vadd.f32 %v1883_v24, %v1627_v26  ;;  %v1645_v35 = vmul.f32 %v1885_v31, %v1643_v7  ;;  %v1887_v40 = vpop.eup %1886  ;;  %vm1650_vm12 = vweird.f32 %v1885_v31 }
 0x5b8   :  { %v1613_v38 = vsel %vm1612_vm8, %v1881_v28, %v1609_v32  ;;  %vm1651_vm14 = vmor %vm1649_vm13, %vm1650_vm12 }
 0x5b9   :  { %v1618_v41 = vsel %vm1615_vm10, %v1617_v33, %v1613_v38  ;;  %v1632_v42 = vsel %vm1631_vm9, %v1883_v24, %v1628_v34  ;;  %v1646_v47 = vsub.f32 1.0, %v1645_v35 }
 0x5ba   :  { %v1637_v0 = vsel %vm1634_vm11, %v1636_v37, %v1632_v42  ;;  %v1660_v46 = vmul.f32 %v1887_v40, %v1618_v41 }
 0x5bb   :  { %v1659_v60 = vmul.f32 %v1637_v0, %v3080_v36  ;;  %v1647_v13 = vmul.f32 %v1885_v31, %v1646_v47  ;;  %v1761_v36 = vld [vmem:[%s3103_s5] ss:$0 sm:$0xff] }
 0x5bd   :  { %v1661_v61 = vadd.f32 %v1660_v46, %v1659_v60  ;;  %v1648_v39 = vadd.f32 %v1885_v31, %v1647_v13 }
 0x5bf   :  { %1888 = vtanh.f32 %v1661_v61  ;;  %v1652_v49 = vsel %vm1651_vm14, %v1885_v31, %v1648_v39 }
 0x5c0   :  { %v1657_v8 = vsel %vm1654_vm15, %v1656_v44, %v1652_v49 }
 0x5c5   :  { %v1889_v45 = vpop.eup %1888 }
 0x5c6   :  { %v1663_v52 = vmul.f32 %v1889_v45, %v1657_v8 }
 0x5c8   :  { %v1664_v51 = vadd.f32 %v1663_v52, %v3084_v43 }
 0x5ca   :  { %v1665_v56 = vmul.f32 0.125, %v1664_v51 }
 0x5cc   :  { %1702 = vmatmul.f32.vlgmr.msrb.gmra.mxu0 %v1665_v56 }
 0x649   :  { %v1703_v53 = vpop.f32.mrf.mxu0 }
 0x64a   :  { %v1704_v48 = vadd.f32 %v1761_v36, %v1703_v53 }
 0x64c   :  { %1706 = vst [vmem:[#allocation12] sm:$0xff] %v1704_v48 }
 0x64d   :  { %1717 = dma.vmem_to_hbm [thread:$0]  %s1713_s24, 128, %s1715_s27, [#allocation5]  }
 0x64e   :  { %2104 = dma.done.wait [#allocation5], 128  }
 0x64f   :  { %2105 = vsyncadd [#allocation5], 4294967168 }
 0x650   :  { %1722 = vsyncpa [#allocation4], 1 }
 0x651   :  { %1723 = vsyncpa [#allocation7], 1 }
 0x652   :  { %1724 = vsyncpa [#allocation10], 1 }
 0x653   :  { %1725 = vsyncpa [#allocation5], 1 }

</bundles_post_ra>
